<compile_context>
chip_gen: v6e
topology: v6e:2x2x1
jax: 0.10.0
libtpu: 0.0.40
codegen_flags: <defaults>
</compile_context>

<pallas_src>
import jax
import jax.numpy as jnp
from jax.experimental import pallas as pl
from jax.experimental.pallas import tpu as pltpu


def _make_transe_kernel(tb: int, d: int):
    """Build the kernel body for a TB-row tile with (padded) embed dim d."""

    def kernel(h_idx, r_idx, t_idx, n_idx,          # scalar-prefetch (SMEM)
               ent_hbm, rel_hbm,                    # full tables (HBM / ANY)
               out_ref,                             # (tb, 2*d) VMEM block
               hbuf, rbuf, tbuf, nbuf, sems):       # VMEM scratch + DMA sems
        base = pl.program_id(0) * tb

        def row_copy(table_ref, row_idx, dst_buf, j, sem):
            return pltpu.make_async_copy(
                table_ref.at[pl.ds(row_idx, 1), :],
                dst_buf.at[pl.ds(j, 1), :],
                sem)

        # Issue all 4*tb row-gather DMAs before waiting on any of them so the
        # small latency-bound transfers overlap each other.
        for j in range(tb):
            row_copy(ent_hbm, h_idx[base + j], hbuf, j, sems.at[0]).start()
            row_copy(rel_hbm, r_idx[base + j], rbuf, j, sems.at[1]).start()
            row_copy(ent_hbm, t_idx[base + j], tbuf, j, sems.at[2]).start()
            row_copy(ent_hbm, n_idx[base + j], nbuf, j, sems.at[3]).start()
        # Drain: one wait per issued copy (same sizes, same semaphores).
        for j in range(tb):
            row_copy(ent_hbm, 0, hbuf, j, sems.at[0]).wait()
            row_copy(rel_hbm, 0, rbuf, j, sems.at[1]).wait()
            row_copy(ent_hbm, 0, tbuf, j, sems.at[2]).wait()
            row_copy(ent_hbm, 0, nbuf, j, sems.at[3]).wait()

        # One vectorized TransE compute over the whole (tb, d) tile; combined
        # lane-dense output: columns [0:d) = score, [d:2d) = neg_score.
        hr = hbuf[...] + rbuf[...]
        out_ref[:, :d] = hr - tbuf[...]
        out_ref[:, d:] = hr - nbuf[...]

    return kernel


def transe_forward(entity_emb, relation_emb, h_idx, r_idx, t_idx, neg_idx,
                   *, tb: int = 256):
    """Pallas TransE forward.

    entity_emb:   (Ne, D) float32
    relation_emb: (Nr, D) float32
    h_idx, r_idx, t_idx, neg_idx: (B,) int32
    returns (score, neg_score), each (B, 1, D) float32.
    """
    entity_emb = jnp.asarray(entity_emb, jnp.float32)
    relation_emb = jnp.asarray(relation_emb, jnp.float32)
    B = h_idx.shape[0]
    _, D = entity_emb.shape

    # Pad embed dim to a lane multiple (handles the module's default D=100).
    D_pad = ((D + 127) // 128) * 128
    if D_pad != D:
        entity_emb = jnp.pad(entity_emb, ((0, 0), (0, D_pad - D)))
        relation_emb = jnp.pad(relation_emb, ((0, 0), (0, D_pad - D)))

    # Tile size: multiple of 8 (f32 sublanes), no larger than the padded batch.
    tb = min(max(int(tb), 8), ((B + 7) // 8) * 8)
    tb = ((tb + 7) // 8) * 8
    B_pad = ((B + tb - 1) // tb) * tb

    def pad_idx(x):
        x = jnp.asarray(x, jnp.int32)
        if B_pad != B:
            x = jnp.pad(x, (0, B_pad - B))   # index 0 is always valid
        return x

    h_idx, r_idx, t_idx, neg_idx = (pad_idx(h_idx), pad_idx(r_idx),
                                    pad_idx(t_idx), pad_idx(neg_idx))

    kernel = _make_transe_kernel(tb, D_pad)

    out = pl.pallas_call(
        kernel,
        out_shape=jax.ShapeDtypeStruct((B_pad, 2 * D_pad), jnp.float32),
        grid_spec=pltpu.PrefetchScalarGridSpec(
            num_scalar_prefetch=4,
            grid=(B_pad // tb,),
            in_specs=[
                pl.BlockSpec(memory_space=pl.ANY),   # entity table (passed once)
                pl.BlockSpec(memory_space=pl.ANY),   # relation table
            ],
            out_specs=pl.BlockSpec((tb, 2 * D_pad),
                                   lambda i, h, r, t, n: (i, 0)),
            scratch_shapes=[
                pltpu.VMEM((tb, D_pad), jnp.float32),   # h rows
                pltpu.VMEM((tb, D_pad), jnp.float32),   # r rows
                pltpu.VMEM((tb, D_pad), jnp.float32),   # t rows
                pltpu.VMEM((tb, D_pad), jnp.float32),   # neg rows
                pltpu.SemaphoreType.DMA((4,)),
            ]),
        compiler_params=pltpu.CompilerParams(
            dimension_semantics=("parallel",)),
        cost_estimate=pl.CostEstimate(
            flops=3 * B_pad * D_pad,
            transcendentals=0,
            bytes_accessed=6 * B_pad * D_pad * 4),
    )(h_idx, r_idx, t_idx, neg_idx, entity_emb, relation_emb)

    # Unpack the combined slab, drop padding, and match PyTorch's (B, 1, D).
    score = out[:B, :D].reshape(B, 1, D)
    neg_score = out[:B, D_pad:D_pad + D].reshape(B, 1, D)
    return score, neg_score


def _reference_forward(entity_emb, relation_emb, h_idx, r_idx, t_idx, neg_idx):
    h = entity_emb[h_idx][:, None, :]
    t = entity_emb[t_idx][:, None, :]
    r = relation_emb[r_idx][:, None, :]
    n = entity_emb[neg_idx][:, None, :]
    return h + r - t, h + r - n


if __name__ == "__main__":
    # TODO(synk): the word->index dict remap and random.randint negative sampling
    # of the PyTorch module are host-side; reproduced here with jax.random.
    def run_case(num_entities, num_relations, embed_dim, batch):
        key = jax.random.PRNGKey(0)
        k_e, k_r, k_h, k_ri, k_t, k_n = jax.random.split(key, 6)

        # xavier_normal_ init: std = sqrt(2 / (fan_in + fan_out))
        std_e = (2.0 / (num_entities + embed_dim)) ** 0.5
        std_r = (2.0 / (num_relations + embed_dim)) ** 0.5
        entity_emb = jax.random.normal(
            k_e, (num_entities, embed_dim), jnp.float32) * std_e
        relation_emb = jax.random.normal(
            k_r, (num_relations, embed_dim), jnp.float32) * std_r
        # F.normalize(relation weights, p=2, dim=-1)
        relation_emb = relation_emb / jnp.maximum(
            jnp.linalg.norm(relation_emb, axis=-1, keepdims=True), 1e-12)

        h_idx = jax.random.randint(k_h, (batch,), 0, num_entities, jnp.int32)
        r_idx = jax.random.randint(k_ri, (batch,), 0, num_relations, jnp.int32)
        t_idx = jax.random.randint(k_t, (batch,), 0, num_entities, jnp.int32)
        neg_idx = jax.random.randint(k_n, (batch,), 0, num_entities, jnp.int32)

        score, neg_score = transe_forward(
            entity_emb, relation_emb, h_idx, r_idx, t_idx, neg_idx)
        jax.block_until_ready((score, neg_score))

        ref_score, ref_neg = _reference_forward(
            entity_emb, relation_emb, h_idx, r_idx, t_idx, neg_idx)

        assert score.shape == (batch, 1, embed_dim)
        assert neg_score.shape == (batch, 1, embed_dim)
        assert jnp.allclose(score, ref_score, atol=1e-5, rtol=1e-5)
        assert jnp.allclose(neg_score, ref_neg, atol=1e-5, rtol=1e-5)

    # Lane-exact embed dim, batch a multiple of 8.
    run_case(num_entities=64, num_relations=16, embed_dim=128, batch=8)
    # Module's default embed dim (100) + ragged batch -> exercises D/B padding.
    run_case(num_entities=32, num_relations=8, embed_dim=100, batch=5)

    print("KERNEL_OK")
</pallas_src>

<mosaic_0001>
module attributes {stable_mosaic.version = 11 : i64} {
  func.func @kernel(%arg0: i32, %arg1: memref<8xi32, #tpu.memory_space<smem>>, %arg2: memref<8xi32, #tpu.memory_space<smem>>, %arg3: memref<8xi32, #tpu.memory_space<smem>>, %arg4: memref<8xi32, #tpu.memory_space<smem>>, %arg5: memref<64x128xf32, #tpu.memory_space<any>>, %arg6: memref<16x128xf32, #tpu.memory_space<any>>, %arg7: memref<8x256xf32, #tpu.memory_space<vmem>>, %arg8: memref<8x128xf32, #tpu.memory_space<vmem>>, %arg9: memref<8x128xf32, #tpu.memory_space<vmem>>, %arg10: memref<8x128xf32, #tpu.memory_space<vmem>>, %arg11: memref<8x128xf32, #tpu.memory_space<vmem>>, %arg12: memref<4x!tpu.dma_semaphore, #tpu.memory_space<semaphore_mem>>) attributes {dimension_semantics = [#tpu.dimension_semantics<parallel>], iteration_bounds = array<i64: 1>, scalar_prefetch = 4 : i64, scratch_operands = 5 : i64, tpu.core_type = #tpu.core_type<tc>, window_params = [{}, {}, {transform_indices = @transform_2, window_bounds = array<i64: 8, 256>}]} {
    %c8_i32 = arith.constant 8 : i32
    %0 = arith.muli %arg0, %c8_i32 : i32
    %c0_i32 = arith.constant 0 : i32
    %1 = arith.addi %0, %c0_i32 : i32
    %2 = arith.index_cast %1 : i32 to index
    %3 = memref.load %arg1[%2] : memref<8xi32, #tpu.memory_space<smem>>
    %c0_i32_0 = arith.constant 0 : i32
    %c0_i32_1 = arith.constant 0 : i32
    %4 = tpu.memref_slice %arg5[%3, %c0_i32_1] : memref<64x128xf32, #tpu.memory_space<any>> -> memref<1x128xf32, #tpu.memory_space<any>>
    %c0_i32_2 = arith.constant 0 : i32
    %c0_i32_3 = arith.constant 0 : i32
    %5 = tpu.memref_slice %arg8[%c0_i32_2, %c0_i32_3] : memref<8x128xf32, #tpu.memory_space<vmem>> -> memref<1x128xf32, #tpu.memory_space<vmem>>
    %6 = tpu.memref_slice %arg12[%c0_i32_0] : memref<4x!tpu.dma_semaphore, #tpu.memory_space<semaphore_mem>> -> memref<1x!tpu.dma_semaphore, #tpu.memory_space<semaphore_mem>>
    %7 = tpu.memref_squeeze %6 : memref<1x!tpu.dma_semaphore, #tpu.memory_space<semaphore_mem>> -> memref<!tpu.dma_semaphore, #tpu.memory_space<semaphore_mem>>
    tpu.enqueue_dma source(%4 : memref<1x128xf32, #tpu.memory_space<any>>) target(%5 : memref<1x128xf32, #tpu.memory_space<vmem>>) target_semaphore(%7 : memref<!tpu.dma_semaphore, #tpu.memory_space<semaphore_mem>>)
    %c0_i32_4 = arith.constant 0 : i32
    %8 = arith.addi %0, %c0_i32_4 : i32
    %9 = arith.index_cast %8 : i32 to index
    %10 = memref.load %arg2[%9] : memref<8xi32, #tpu.memory_space<smem>>
    %c1_i32 = arith.constant 1 : i32
    %c0_i32_5 = arith.constant 0 : i32
    %11 = tpu.memref_slice %arg6[%10, %c0_i32_5] : memref<16x128xf32, #tpu.memory_space<any>> -> memref<1x128xf32, #tpu.memory_space<any>>
    %c0_i32_6 = arith.constant 0 : i32
    %c0_i32_7 = arith.constant 0 : i32
    %12 = tpu.memref_slice %arg9[%c0_i32_6, %c0_i32_7] : memref<8x128xf32, #tpu.memory_space<vmem>> -> memref<1x128xf32, #tpu.memory_space<vmem>>
    %13 = tpu.memref_slice %arg12[%c1_i32] : memref<4x!tpu.dma_semaphore, #tpu.memory_space<semaphore_mem>> -> memref<1x!tpu.dma_semaphore, #tpu.memory_space<semaphore_mem>>
    %14 = tpu.memref_squeeze %13 : memref<1x!tpu.dma_semaphore, #tpu.memory_space<semaphore_mem>> -> memref<!tpu.dma_semaphore, #tpu.memory_space<semaphore_mem>>
    tpu.enqueue_dma source(%11 : memref<1x128xf32, #tpu.memory_space<any>>) target(%12 : memref<1x128xf32, #tpu.memory_space<vmem>>) target_semaphore(%14 : memref<!tpu.dma_semaphore, #tpu.memory_space<semaphore_mem>>)
    %c0_i32_8 = arith.constant 0 : i32
    %15 = arith.addi %0, %c0_i32_8 : i32
    %16 = arith.index_cast %15 : i32 to index
    %17 = memref.load %arg3[%16] : memref<8xi32, #tpu.memory_space<smem>>
    %c2_i32 = arith.constant 2 : i32
    %c0_i32_9 = arith.constant 0 : i32
    %18 = tpu.memref_slice %arg5[%17, %c0_i32_9] : memref<64x128xf32, #tpu.memory_space<any>> -> memref<1x128xf32, #tpu.memory_space<any>>
    %c0_i32_10 = arith.constant 0 : i32
    %c0_i32_11 = arith.constant 0 : i32
    %19 = tpu.memref_slice %arg10[%c0_i32_10, %c0_i32_11] : memref<8x128xf32, #tpu.memory_space<vmem>> -> memref<1x128xf32, #tpu.memory_space<vmem>>
    %20 = tpu.memref_slice %arg12[%c2_i32] : memref<4x!tpu.dma_semaphore, #tpu.memory_space<semaphore_mem>> -> memref<1x!tpu.dma_semaphore, #tpu.memory_space<semaphore_mem>>
    %21 = tpu.memref_squeeze %20 : memref<1x!tpu.dma_semaphore, #tpu.memory_space<semaphore_mem>> -> memref<!tpu.dma_semaphore, #tpu.memory_space<semaphore_mem>>
    tpu.enqueue_dma source(%18 : memref<1x128xf32, #tpu.memory_space<any>>) target(%19 : memref<1x128xf32, #tpu.memory_space<vmem>>) target_semaphore(%21 : memref<!tpu.dma_semaphore, #tpu.memory_space<semaphore_mem>>)
    %c0_i32_12 = arith.constant 0 : i32
    %22 = arith.addi %0, %c0_i32_12 : i32
    %23 = arith.index_cast %22 : i32 to index
    %24 = memref.load %arg4[%23] : memref<8xi32, #tpu.memory_space<smem>>
    %c3_i32 = arith.constant 3 : i32
    %c0_i32_13 = arith.constant 0 : i32
    %25 = tpu.memref_slice %arg5[%24, %c0_i32_13] : memref<64x128xf32, #tpu.memory_space<any>> -> memref<1x128xf32, #tpu.memory_space<any>>
    %c0_i32_14 = arith.constant 0 : i32
    %c0_i32_15 = arith.constant 0 : i32
    %26 = tpu.memref_slice %arg11[%c0_i32_14, %c0_i32_15] : memref<8x128xf32, #tpu.memory_space<vmem>> -> memref<1x128xf32, #tpu.memory_space<vmem>>
    %27 = tpu.memref_slice %arg12[%c3_i32] : memref<4x!tpu.dma_semaphore, #tpu.memory_space<semaphore_mem>> -> memref<1x!tpu.dma_semaphore, #tpu.memory_space<semaphore_mem>>
    %28 = tpu.memref_squeeze %27 : memref<1x!tpu.dma_semaphore, #tpu.memory_space<semaphore_mem>> -> memref<!tpu.dma_semaphore, #tpu.memory_space<semaphore_mem>>
    tpu.enqueue_dma source(%25 : memref<1x128xf32, #tpu.memory_space<any>>) target(%26 : memref<1x128xf32, #tpu.memory_space<vmem>>) target_semaphore(%28 : memref<!tpu.dma_semaphore, #tpu.memory_space<semaphore_mem>>)
    %c1_i32_16 = arith.constant 1 : i32
    %29 = arith.addi %0, %c1_i32_16 : i32
    %30 = arith.index_cast %29 : i32 to index
    %31 = memref.load %arg1[%30] : memref<8xi32, #tpu.memory_space<smem>>
    %c0_i32_17 = arith.constant 0 : i32
    %c0_i32_18 = arith.constant 0 : i32
    %32 = tpu.memref_slice %arg5[%31, %c0_i32_18] : memref<64x128xf32, #tpu.memory_space<any>> -> memref<1x128xf32, #tpu.memory_space<any>>
    %c1_i32_19 = arith.constant 1 : i32
    %c0_i32_20 = arith.constant 0 : i32
    %33 = tpu.memref_slice %arg8[%c1_i32_19, %c0_i32_20] : memref<8x128xf32, #tpu.memory_space<vmem>> -> memref<1x128xf32, #tpu.memory_space<vmem>>
    %34 = tpu.memref_slice %arg12[%c0_i32_17] : memref<4x!tpu.dma_semaphore, #tpu.memory_space<semaphore_mem>> -> memref<1x!tpu.dma_semaphore, #tpu.memory_space<semaphore_mem>>
    %35 = tpu.memref_squeeze %34 : memref<1x!tpu.dma_semaphore, #tpu.memory_space<semaphore_mem>> -> memref<!tpu.dma_semaphore, #tpu.memory_space<semaphore_mem>>
    tpu.enqueue_dma source(%32 : memref<1x128xf32, #tpu.memory_space<any>>) target(%33 : memref<1x128xf32, #tpu.memory_space<vmem>>) target_semaphore(%35 : memref<!tpu.dma_semaphore, #tpu.memory_space<semaphore_mem>>)
    %c1_i32_21 = arith.constant 1 : i32
    %36 = arith.addi %0, %c1_i32_21 : i32
    %37 = arith.index_cast %36 : i32 to index
    %38 = memref.load %arg2[%37] : memref<8xi32, #tpu.memory_space<smem>>
    %c1_i32_22 = arith.constant 1 : i32
    %c0_i32_23 = arith.constant 0 : i32
    %39 = tpu.memref_slice %arg6[%38, %c0_i32_23] : memref<16x128xf32, #tpu.memory_space<any>> -> memref<1x128xf32, #tpu.memory_space<any>>
    %c1_i32_24 = arith.constant 1 : i32
    %c0_i32_25 = arith.constant 0 : i32
    %40 = tpu.memref_slice %arg9[%c1_i32_24, %c0_i32_25] : memref<8x128xf32, #tpu.memory_space<vmem>> -> memref<1x128xf32, #tpu.memory_space<vmem>>
    %41 = tpu.memref_slice %arg12[%c1_i32_22] : memref<4x!tpu.dma_semaphore, #tpu.memory_space<semaphore_mem>> -> memref<1x!tpu.dma_semaphore, #tpu.memory_space<semaphore_mem>>
    %42 = tpu.memref_squeeze %41 : memref<1x!tpu.dma_semaphore, #tpu.memory_space<semaphore_mem>> -> memref<!tpu.dma_semaphore, #tpu.memory_space<semaphore_mem>>
    tpu.enqueue_dma source(%39 : memref<1x128xf32, #tpu.memory_space<any>>) target(%40 : memref<1x128xf32, #tpu.memory_space<vmem>>) target_semaphore(%42 : memref<!tpu.dma_semaphore, #tpu.memory_space<semaphore_mem>>)
    %c1_i32_26 = arith.constant 1 : i32
    %43 = arith.addi %0, %c1_i32_26 : i32
    %44 = arith.index_cast %43 : i32 to index
    %45 = memref.load %arg3[%44] : memref<8xi32, #tpu.memory_space<smem>>
    %c2_i32_27 = arith.constant 2 : i32
    %c0_i32_28 = arith.constant 0 : i32
    %46 = tpu.memref_slice %arg5[%45, %c0_i32_28] : memref<64x128xf32, #tpu.memory_space<any>> -> memref<1x128xf32, #tpu.memory_space<any>>
    %c1_i32_29 = arith.constant 1 : i32
    %c0_i32_30 = arith.constant 0 : i32
    %47 = tpu.memref_slice %arg10[%c1_i32_29, %c0_i32_30] : memref<8x128xf32, #tpu.memory_space<vmem>> -> memref<1x128xf32, #tpu.memory_space<vmem>>
    %48 = tpu.memref_slice %arg12[%c2_i32_27] : memref<4x!tpu.dma_semaphore, #tpu.memory_space<semaphore_mem>> -> memref<1x!tpu.dma_semaphore, #tpu.memory_space<semaphore_mem>>
    %49 = tpu.memref_squeeze %48 : memref<1x!tpu.dma_semaphore, #tpu.memory_space<semaphore_mem>> -> memref<!tpu.dma_semaphore, #tpu.memory_space<semaphore_mem>>
    tpu.enqueue_dma source(%46 : memref<1x128xf32, #tpu.memory_space<any>>) target(%47 : memref<1x128xf32, #tpu.memory_space<vmem>>) target_semaphore(%49 : memref<!tpu.dma_semaphore, #tpu.memory_space<semaphore_mem>>)
    %c1_i32_31 = arith.constant 1 : i32
    %50 = arith.addi %0, %c1_i32_31 : i32
    %51 = arith.index_cast %50 : i32 to index
    %52 = memref.load %arg4[%51] : memref<8xi32, #tpu.memory_space<smem>>
    %c3_i32_32 = arith.constant 3 : i32
    %c0_i32_33 = arith.constant 0 : i32
    %53 = tpu.memref_slice %arg5[%52, %c0_i32_33] : memref<64x128xf32, #tpu.memory_space<any>> -> memref<1x128xf32, #tpu.memory_space<any>>
    %c1_i32_34 = arith.constant 1 : i32
    %c0_i32_35 = arith.constant 0 : i32
    %54 = tpu.memref_slice %arg11[%c1_i32_34, %c0_i32_35] : memref<8x128xf32, #tpu.memory_space<vmem>> -> memref<1x128xf32, #tpu.memory_space<vmem>>
    %55 = tpu.memref_slice %arg12[%c3_i32_32] : memref<4x!tpu.dma_semaphore, #tpu.memory_space<semaphore_mem>> -> memref<1x!tpu.dma_semaphore, #tpu.memory_space<semaphore_mem>>
    %56 = tpu.memref_squeeze %55 : memref<1x!tpu.dma_semaphore, #tpu.memory_space<semaphore_mem>> -> memref<!tpu.dma_semaphore, #tpu.memory_space<semaphore_mem>>
    tpu.enqueue_dma source(%53 : memref<1x128xf32, #tpu.memory_space<any>>) target(%54 : memref<1x128xf32, #tpu.memory_space<vmem>>) target_semaphore(%56 : memref<!tpu.dma_semaphore, #tpu.memory_space<semaphore_mem>>)
    %c2_i32_36 = arith.constant 2 : i32
    %57 = arith.addi %0, %c2_i32_36 : i32
    %58 = arith.index_cast %57 : i32 to index
    %59 = memref.load %arg1[%58] : memref<8xi32, #tpu.memory_space<smem>>
    %c0_i32_37 = arith.constant 0 : i32
    %c0_i32_38 = arith.constant 0 : i32
    %60 = tpu.memref_slice %arg5[%59, %c0_i32_38] : memref<64x128xf32, #tpu.memory_space<any>> -> memref<1x128xf32, #tpu.memory_space<any>>
    %c2_i32_39 = arith.constant 2 : i32
    %c0_i32_40 = arith.constant 0 : i32
    %61 = tpu.memref_slice %arg8[%c2_i32_39, %c0_i32_40] : memref<8x128xf32, #tpu.memory_space<vmem>> -> memref<1x128xf32, #tpu.memory_space<vmem>>
    %62 = tpu.memref_slice %arg12[%c0_i32_37] : memref<4x!tpu.dma_semaphore, #tpu.memory_space<semaphore_mem>> -> memref<1x!tpu.dma_semaphore, #tpu.memory_space<semaphore_mem>>
    %63 = tpu.memref_squeeze %62 : memref<1x!tpu.dma_semaphore, #tpu.memory_space<semaphore_mem>> -> memref<!tpu.dma_semaphore, #tpu.memory_space<semaphore_mem>>
    tpu.enqueue_dma source(%60 : memref<1x128xf32, #tpu.memory_space<any>>) target(%61 : memref<1x128xf32, #tpu.memory_space<vmem>>) target_semaphore(%63 : memref<!tpu.dma_semaphore, #tpu.memory_space<semaphore_mem>>)
    %c2_i32_41 = arith.constant 2 : i32
    %64 = arith.addi %0, %c2_i32_41 : i32
    %65 = arith.index_cast %64 : i32 to index
    %66 = memref.load %arg2[%65] : memref<8xi32, #tpu.memory_space<smem>>
    %c1_i32_42 = arith.constant 1 : i32
    %c0_i32_43 = arith.constant 0 : i32
    %67 = tpu.memref_slice %arg6[%66, %c0_i32_43] : memref<16x128xf32, #tpu.memory_space<any>> -> memref<1x128xf32, #tpu.memory_space<any>>
    %c2_i32_44 = arith.constant 2 : i32
    %c0_i32_45 = arith.constant 0 : i32
    %68 = tpu.memref_slice %arg9[%c2_i32_44, %c0_i32_45] : memref<8x128xf32, #tpu.memory_space<vmem>> -> memref<1x128xf32, #tpu.memory_space<vmem>>
    %69 = tpu.memref_slice %arg12[%c1_i32_42] : memref<4x!tpu.dma_semaphore, #tpu.memory_space<semaphore_mem>> -> memref<1x!tpu.dma_semaphore, #tpu.memory_space<semaphore_mem>>
    %70 = tpu.memref_squeeze %69 : memref<1x!tpu.dma_semaphore, #tpu.memory_space<semaphore_mem>> -> memref<!tpu.dma_semaphore, #tpu.memory_space<semaphore_mem>>
    tpu.enqueue_dma source(%67 : memref<1x128xf32, #tpu.memory_space<any>>) target(%68 : memref<1x128xf32, #tpu.memory_space<vmem>>) target_semaphore(%70 : memref<!tpu.dma_semaphore, #tpu.memory_space<semaphore_mem>>)
    %c2_i32_46 = arith.constant 2 : i32
    %71 = arith.addi %0, %c2_i32_46 : i32
    %72 = arith.index_cast %71 : i32 to index
    %73 = memref.load %arg3[%72] : memref<8xi32, #tpu.memory_space<smem>>
    %c2_i32_47 = arith.constant 2 : i32
    %c0_i32_48 = arith.constant 0 : i32
    %74 = tpu.memref_slice %arg5[%73, %c0_i32_48] : memref<64x128xf32, #tpu.memory_space<any>> -> memref<1x128xf32, #tpu.memory_space<any>>
    %c2_i32_49 = arith.constant 2 : i32
    %c0_i32_50 = arith.constant 0 : i32
    %75 = tpu.memref_slice %arg10[%c2_i32_49, %c0_i32_50] : memref<8x128xf32, #tpu.memory_space<vmem>> -> memref<1x128xf32, #tpu.memory_space<vmem>>
    %76 = tpu.memref_slice %arg12[%c2_i32_47] : memref<4x!tpu.dma_semaphore, #tpu.memory_space<semaphore_mem>> -> memref<1x!tpu.dma_semaphore, #tpu.memory_space<semaphore_mem>>
    %77 = tpu.memref_squeeze %76 : memref<1x!tpu.dma_semaphore, #tpu.memory_space<semaphore_mem>> -> memref<!tpu.dma_semaphore, #tpu.memory_space<semaphore_mem>>
    tpu.enqueue_dma source(%74 : memref<1x128xf32, #tpu.memory_space<any>>) target(%75 : memref<1x128xf32, #tpu.memory_space<vmem>>) target_semaphore(%77 : memref<!tpu.dma_semaphore, #tpu.memory_space<semaphore_mem>>)
    %c2_i32_51 = arith.constant 2 : i32
    %78 = arith.addi %0, %c2_i32_51 : i32
    %79 = arith.index_cast %78 : i32 to index
    %80 = memref.load %arg4[%79] : memref<8xi32, #tpu.memory_space<smem>>
    %c3_i32_52 = arith.constant 3 : i32
    %c0_i32_53 = arith.constant 0 : i32
    %81 = tpu.memref_slice %arg5[%80, %c0_i32_53] : memref<64x128xf32, #tpu.memory_space<any>> -> memref<1x128xf32, #tpu.memory_space<any>>
    %c2_i32_54 = arith.constant 2 : i32
    %c0_i32_55 = arith.constant 0 : i32
    %82 = tpu.memref_slice %arg11[%c2_i32_54, %c0_i32_55] : memref<8x128xf32, #tpu.memory_space<vmem>> -> memref<1x128xf32, #tpu.memory_space<vmem>>
    %83 = tpu.memref_slice %arg12[%c3_i32_52] : memref<4x!tpu.dma_semaphore, #tpu.memory_space<semaphore_mem>> -> memref<1x!tpu.dma_semaphore, #tpu.memory_space<semaphore_mem>>
    %84 = tpu.memref_squeeze %83 : memref<1x!tpu.dma_semaphore, #tpu.memory_space<semaphore_mem>> -> memref<!tpu.dma_semaphore, #tpu.memory_space<semaphore_mem>>
    tpu.enqueue_dma source(%81 : memref<1x128xf32, #tpu.memory_space<any>>) target(%82 : memref<1x128xf32, #tpu.memory_space<vmem>>) target_semaphore(%84 : memref<!tpu.dma_semaphore, #tpu.memory_space<semaphore_mem>>)
    %c3_i32_56 = arith.constant 3 : i32
    %85 = arith.addi %0, %c3_i32_56 : i32
    %86 = arith.index_cast %85 : i32 to index
    %87 = memref.load %arg1[%86] : memref<8xi32, #tpu.memory_space<smem>>
    %c0_i32_57 = arith.constant 0 : i32
    %c0_i32_58 = arith.constant 0 : i32
    %88 = tpu.memref_slice %arg5[%87, %c0_i32_58] : memref<64x128xf32, #tpu.memory_space<any>> -> memref<1x128xf32, #tpu.memory_space<any>>
    %c3_i32_59 = arith.constant 3 : i32
    %c0_i32_60 = arith.constant 0 : i32
    %89 = tpu.memref_slice %arg8[%c3_i32_59, %c0_i32_60] : memref<8x128xf32, #tpu.memory_space<vmem>> -> memref<1x128xf32, #tpu.memory_space<vmem>>
    %90 = tpu.memref_slice %arg12[%c0_i32_57] : memref<4x!tpu.dma_semaphore, #tpu.memory_space<semaphore_mem>> -> memref<1x!tpu.dma_semaphore, #tpu.memory_space<semaphore_mem>>
    %91 = tpu.memref_squeeze %90 : memref<1x!tpu.dma_semaphore, #tpu.memory_space<semaphore_mem>> -> memref<!tpu.dma_semaphore, #tpu.memory_space<semaphore_mem>>
    tpu.enqueue_dma source(%88 : memref<1x128xf32, #tpu.memory_space<any>>) target(%89 : memref<1x128xf32, #tpu.memory_space<vmem>>) target_semaphore(%91 : memref<!tpu.dma_semaphore, #tpu.memory_space<semaphore_mem>>)
    %c3_i32_61 = arith.constant 3 : i32
    %92 = arith.addi %0, %c3_i32_61 : i32
    %93 = arith.index_cast %92 : i32 to index
    %94 = memref.load %arg2[%93] : memref<8xi32, #tpu.memory_space<smem>>
    %c1_i32_62 = arith.constant 1 : i32
    %c0_i32_63 = arith.constant 0 : i32
    %95 = tpu.memref_slice %arg6[%94, %c0_i32_63] : memref<16x128xf32, #tpu.memory_space<any>> -> memref<1x128xf32, #tpu.memory_space<any>>
    %c3_i32_64 = arith.constant 3 : i32
    %c0_i32_65 = arith.constant 0 : i32
    %96 = tpu.memref_slice %arg9[%c3_i32_64, %c0_i32_65] : memref<8x128xf32, #tpu.memory_space<vmem>> -> memref<1x128xf32, #tpu.memory_space<vmem>>
    %97 = tpu.memref_slice %arg12[%c1_i32_62] : memref<4x!tpu.dma_semaphore, #tpu.memory_space<semaphore_mem>> -> memref<1x!tpu.dma_semaphore, #tpu.memory_space<semaphore_mem>>
    %98 = tpu.memref_squeeze %97 : memref<1x!tpu.dma_semaphore, #tpu.memory_space<semaphore_mem>> -> memref<!tpu.dma_semaphore, #tpu.memory_space<semaphore_mem>>
    tpu.enqueue_dma source(%95 : memref<1x128xf32, #tpu.memory_space<any>>) target(%96 : memref<1x128xf32, #tpu.memory_space<vmem>>) target_semaphore(%98 : memref<!tpu.dma_semaphore, #tpu.memory_space<semaphore_mem>>)
    %c3_i32_66 = arith.constant 3 : i32
    %99 = arith.addi %0, %c3_i32_66 : i32
    %100 = arith.index_cast %99 : i32 to index
    %101 = memref.load %arg3[%100] : memref<8xi32, #tpu.memory_space<smem>>
    %c2_i32_67 = arith.constant 2 : i32
    %c0_i32_68 = arith.constant 0 : i32
    %102 = tpu.memref_slice %arg5[%101, %c0_i32_68] : memref<64x128xf32, #tpu.memory_space<any>> -> memref<1x128xf32, #tpu.memory_space<any>>
    %c3_i32_69 = arith.constant 3 : i32
    %c0_i32_70 = arith.constant 0 : i32
    %103 = tpu.memref_slice %arg10[%c3_i32_69, %c0_i32_70] : memref<8x128xf32, #tpu.memory_space<vmem>> -> memref<1x128xf32, #tpu.memory_space<vmem>>
    %104 = tpu.memref_slice %arg12[%c2_i32_67] : memref<4x!tpu.dma_semaphore, #tpu.memory_space<semaphore_mem>> -> memref<1x!tpu.dma_semaphore, #tpu.memory_space<semaphore_mem>>
    %105 = tpu.memref_squeeze %104 : memref<1x!tpu.dma_semaphore, #tpu.memory_space<semaphore_mem>> -> memref<!tpu.dma_semaphore, #tpu.memory_space<semaphore_mem>>
    tpu.enqueue_dma source(%102 : memref<1x128xf32, #tpu.memory_space<any>>) target(%103 : memref<1x128xf32, #tpu.memory_space<vmem>>) target_semaphore(%105 : memref<!tpu.dma_semaphore, #tpu.memory_space<semaphore_mem>>)
    %c3_i32_71 = arith.constant 3 : i32
    %106 = arith.addi %0, %c3_i32_71 : i32
    %107 = arith.index_cast %106 : i32 to index
    %108 = memref.load %arg4[%107] : memref<8xi32, #tpu.memory_space<smem>>
    %c3_i32_72 = arith.constant 3 : i32
    %c0_i32_73 = arith.constant 0 : i32
    %109 = tpu.memref_slice %arg5[%108, %c0_i32_73] : memref<64x128xf32, #tpu.memory_space<any>> -> memref<1x128xf32, #tpu.memory_space<any>>
    %c3_i32_74 = arith.constant 3 : i32
    %c0_i32_75 = arith.constant 0 : i32
    %110 = tpu.memref_slice %arg11[%c3_i32_74, %c0_i32_75] : memref<8x128xf32, #tpu.memory_space<vmem>> -> memref<1x128xf32, #tpu.memory_space<vmem>>
    %111 = tpu.memref_slice %arg12[%c3_i32_72] : memref<4x!tpu.dma_semaphore, #tpu.memory_space<semaphore_mem>> -> memref<1x!tpu.dma_semaphore, #tpu.memory_space<semaphore_mem>>
    %112 = tpu.memref_squeeze %111 : memref<1x!tpu.dma_semaphore, #tpu.memory_space<semaphore_mem>> -> memref<!tpu.dma_semaphore, #tpu.memory_space<semaphore_mem>>
    tpu.enqueue_dma source(%109 : memref<1x128xf32, #tpu.memory_space<any>>) target(%110 : memref<1x128xf32, #tpu.memory_space<vmem>>) target_semaphore(%112 : memref<!tpu.dma_semaphore, #tpu.memory_space<semaphore_mem>>)
    %c4_i32 = arith.constant 4 : i32
    %113 = arith.addi %0, %c4_i32 : i32
    %114 = arith.index_cast %113 : i32 to index
    %115 = memref.load %arg1[%114] : memref<8xi32, #tpu.memory_space<smem>>
    %c0_i32_76 = arith.constant 0 : i32
    %c0_i32_77 = arith.constant 0 : i32
    %116 = tpu.memref_slice %arg5[%115, %c0_i32_77] : memref<64x128xf32, #tpu.memory_space<any>> -> memref<1x128xf32, #tpu.memory_space<any>>
    %c4_i32_78 = arith.constant 4 : i32
    %c0_i32_79 = arith.constant 0 : i32
    %117 = tpu.memref_slice %arg8[%c4_i32_78, %c0_i32_79] : memref<8x128xf32, #tpu.memory_space<vmem>> -> memref<1x128xf32, #tpu.memory_space<vmem>>
    %118 = tpu.memref_slice %arg12[%c0_i32_76] : memref<4x!tpu.dma_semaphore, #tpu.memory_space<semaphore_mem>> -> memref<1x!tpu.dma_semaphore, #tpu.memory_space<semaphore_mem>>
    %119 = tpu.memref_squeeze %118 : memref<1x!tpu.dma_semaphore, #tpu.memory_space<semaphore_mem>> -> memref<!tpu.dma_semaphore, #tpu.memory_space<semaphore_mem>>
    tpu.enqueue_dma source(%116 : memref<1x128xf32, #tpu.memory_space<any>>) target(%117 : memref<1x128xf32, #tpu.memory_space<vmem>>) target_semaphore(%119 : memref<!tpu.dma_semaphore, #tpu.memory_space<semaphore_mem>>)
    %c4_i32_80 = arith.constant 4 : i32
    %120 = arith.addi %0, %c4_i32_80 : i32
    %121 = arith.index_cast %120 : i32 to index
    %122 = memref.load %arg2[%121] : memref<8xi32, #tpu.memory_space<smem>>
    %c1_i32_81 = arith.constant 1 : i32
    %c0_i32_82 = arith.constant 0 : i32
    %123 = tpu.memref_slice %arg6[%122, %c0_i32_82] : memref<16x128xf32, #tpu.memory_space<any>> -> memref<1x128xf32, #tpu.memory_space<any>>
    %c4_i32_83 = arith.constant 4 : i32
    %c0_i32_84 = arith.constant 0 : i32
    %124 = tpu.memref_slice %arg9[%c4_i32_83, %c0_i32_84] : memref<8x128xf32, #tpu.memory_space<vmem>> -> memref<1x128xf32, #tpu.memory_space<vmem>>
    %125 = tpu.memref_slice %arg12[%c1_i32_81] : memref<4x!tpu.dma_semaphore, #tpu.memory_space<semaphore_mem>> -> memref<1x!tpu.dma_semaphore, #tpu.memory_space<semaphore_mem>>
    %126 = tpu.memref_squeeze %125 : memref<1x!tpu.dma_semaphore, #tpu.memory_space<semaphore_mem>> -> memref<!tpu.dma_semaphore, #tpu.memory_space<semaphore_mem>>
    tpu.enqueue_dma source(%123 : memref<1x128xf32, #tpu.memory_space<any>>) target(%124 : memref<1x128xf32, #tpu.memory_space<vmem>>) target_semaphore(%126 : memref<!tpu.dma_semaphore, #tpu.memory_space<semaphore_mem>>)
    %c4_i32_85 = arith.constant 4 : i32
    %127 = arith.addi %0, %c4_i32_85 : i32
    %128 = arith.index_cast %127 : i32 to index
    %129 = memref.load %arg3[%128] : memref<8xi32, #tpu.memory_space<smem>>
    %c2_i32_86 = arith.constant 2 : i32
    %c0_i32_87 = arith.constant 0 : i32
    %130 = tpu.memref_slice %arg5[%129, %c0_i32_87] : memref<64x128xf32, #tpu.memory_space<any>> -> memref<1x128xf32, #tpu.memory_space<any>>
    %c4_i32_88 = arith.constant 4 : i32
    %c0_i32_89 = arith.constant 0 : i32
    %131 = tpu.memref_slice %arg10[%c4_i32_88, %c0_i32_89] : memref<8x128xf32, #tpu.memory_space<vmem>> -> memref<1x128xf32, #tpu.memory_space<vmem>>
    %132 = tpu.memref_slice %arg12[%c2_i32_86] : memref<4x!tpu.dma_semaphore, #tpu.memory_space<semaphore_mem>> -> memref<1x!tpu.dma_semaphore, #tpu.memory_space<semaphore_mem>>
    %133 = tpu.memref_squeeze %132 : memref<1x!tpu.dma_semaphore, #tpu.memory_space<semaphore_mem>> -> memref<!tpu.dma_semaphore, #tpu.memory_space<semaphore_mem>>
    tpu.enqueue_dma source(%130 : memref<1x128xf32, #tpu.memory_space<any>>) target(%131 : memref<1x128xf32, #tpu.memory_space<vmem>>) target_semaphore(%133 : memref<!tpu.dma_semaphore, #tpu.memory_space<semaphore_mem>>)
    %c4_i32_90 = arith.constant 4 : i32
    %134 = arith.addi %0, %c4_i32_90 : i32
    %135 = arith.index_cast %134 : i32 to index
    %136 = memref.load %arg4[%135] : memref<8xi32, #tpu.memory_space<smem>>
    %c3_i32_91 = arith.constant 3 : i32
    %c0_i32_92 = arith.constant 0 : i32
    %137 = tpu.memref_slice %arg5[%136, %c0_i32_92] : memref<64x128xf32, #tpu.memory_space<any>> -> memref<1x128xf32, #tpu.memory_space<any>>
    %c4_i32_93 = arith.constant 4 : i32
    %c0_i32_94 = arith.constant 0 : i32
    %138 = tpu.memref_slice %arg11[%c4_i32_93, %c0_i32_94] : memref<8x128xf32, #tpu.memory_space<vmem>> -> memref<1x128xf32, #tpu.memory_space<vmem>>
    %139 = tpu.memref_slice %arg12[%c3_i32_91] : memref<4x!tpu.dma_semaphore, #tpu.memory_space<semaphore_mem>> -> memref<1x!tpu.dma_semaphore, #tpu.memory_space<semaphore_mem>>
    %140 = tpu.memref_squeeze %139 : memref<1x!tpu.dma_semaphore, #tpu.memory_space<semaphore_mem>> -> memref<!tpu.dma_semaphore, #tpu.memory_space<semaphore_mem>>
    tpu.enqueue_dma source(%137 : memref<1x128xf32, #tpu.memory_space<any>>) target(%138 : memref<1x128xf32, #tpu.memory_space<vmem>>) target_semaphore(%140 : memref<!tpu.dma_semaphore, #tpu.memory_space<semaphore_mem>>)
    %c5_i32 = arith.constant 5 : i32
    %141 = arith.addi %0, %c5_i32 : i32
    %142 = arith.index_cast %141 : i32 to index
    %143 = memref.load %arg1[%142] : memref<8xi32, #tpu.memory_space<smem>>
    %c0_i32_95 = arith.constant 0 : i32
    %c0_i32_96 = arith.constant 0 : i32
    %144 = tpu.memref_slice %arg5[%143, %c0_i32_96] : memref<64x128xf32, #tpu.memory_space<any>> -> memref<1x128xf32, #tpu.memory_space<any>>
    %c5_i32_97 = arith.constant 5 : i32
    %c0_i32_98 = arith.constant 0 : i32
    %145 = tpu.memref_slice %arg8[%c5_i32_97, %c0_i32_98] : memref<8x128xf32, #tpu.memory_space<vmem>> -> memref<1x128xf32, #tpu.memory_space<vmem>>
    %146 = tpu.memref_slice %arg12[%c0_i32_95] : memref<4x!tpu.dma_semaphore, #tpu.memory_space<semaphore_mem>> -> memref<1x!tpu.dma_semaphore, #tpu.memory_space<semaphore_mem>>
    %147 = tpu.memref_squeeze %146 : memref<1x!tpu.dma_semaphore, #tpu.memory_space<semaphore_mem>> -> memref<!tpu.dma_semaphore, #tpu.memory_space<semaphore_mem>>
    tpu.enqueue_dma source(%144 : memref<1x128xf32, #tpu.memory_space<any>>) target(%145 : memref<1x128xf32, #tpu.memory_space<vmem>>) target_semaphore(%147 : memref<!tpu.dma_semaphore, #tpu.memory_space<semaphore_mem>>)
    %c5_i32_99 = arith.constant 5 : i32
    %148 = arith.addi %0, %c5_i32_99 : i32
    %149 = arith.index_cast %148 : i32 to index
    %150 = memref.load %arg2[%149] : memref<8xi32, #tpu.memory_space<smem>>
    %c1_i32_100 = arith.constant 1 : i32
    %c0_i32_101 = arith.constant 0 : i32
    %151 = tpu.memref_slice %arg6[%150, %c0_i32_101] : memref<16x128xf32, #tpu.memory_space<any>> -> memref<1x128xf32, #tpu.memory_space<any>>
    %c5_i32_102 = arith.constant 5 : i32
    %c0_i32_103 = arith.constant 0 : i32
    %152 = tpu.memref_slice %arg9[%c5_i32_102, %c0_i32_103] : memref<8x128xf32, #tpu.memory_space<vmem>> -> memref<1x128xf32, #tpu.memory_space<vmem>>
    %153 = tpu.memref_slice %arg12[%c1_i32_100] : memref<4x!tpu.dma_semaphore, #tpu.memory_space<semaphore_mem>> -> memref<1x!tpu.dma_semaphore, #tpu.memory_space<semaphore_mem>>
    %154 = tpu.memref_squeeze %153 : memref<1x!tpu.dma_semaphore, #tpu.memory_space<semaphore_mem>> -> memref<!tpu.dma_semaphore, #tpu.memory_space<semaphore_mem>>
    tpu.enqueue_dma source(%151 : memref<1x128xf32, #tpu.memory_space<any>>) target(%152 : memref<1x128xf32, #tpu.memory_space<vmem>>) target_semaphore(%154 : memref<!tpu.dma_semaphore, #tpu.memory_space<semaphore_mem>>)
    %c5_i32_104 = arith.constant 5 : i32
    %155 = arith.addi %0, %c5_i32_104 : i32
    %156 = arith.index_cast %155 : i32 to index
    %157 = memref.load %arg3[%156] : memref<8xi32, #tpu.memory_space<smem>>
    %c2_i32_105 = arith.constant 2 : i32
    %c0_i32_106 = arith.constant 0 : i32
    %158 = tpu.memref_slice %arg5[%157, %c0_i32_106] : memref<64x128xf32, #tpu.memory_space<any>> -> memref<1x128xf32, #tpu.memory_space<any>>
    %c5_i32_107 = arith.constant 5 : i32
    %c0_i32_108 = arith.constant 0 : i32
    %159 = tpu.memref_slice %arg10[%c5_i32_107, %c0_i32_108] : memref<8x128xf32, #tpu.memory_space<vmem>> -> memref<1x128xf32, #tpu.memory_space<vmem>>
    %160 = tpu.memref_slice %arg12[%c2_i32_105] : memref<4x!tpu.dma_semaphore, #tpu.memory_space<semaphore_mem>> -> memref<1x!tpu.dma_semaphore, #tpu.memory_space<semaphore_mem>>
    %161 = tpu.memref_squeeze %160 : memref<1x!tpu.dma_semaphore, #tpu.memory_space<semaphore_mem>> -> memref<!tpu.dma_semaphore, #tpu.memory_space<semaphore_mem>>
    tpu.enqueue_dma source(%158 : memref<1x128xf32, #tpu.memory_space<any>>) target(%159 : memref<1x128xf32, #tpu.memory_space<vmem>>) target_semaphore(%161 : memref<!tpu.dma_semaphore, #tpu.memory_space<semaphore_mem>>)
    %c5_i32_109 = arith.constant 5 : i32
    %162 = arith.addi %0, %c5_i32_109 : i32
    %163 = arith.index_cast %162 : i32 to index
    %164 = memref.load %arg4[%163] : memref<8xi32, #tpu.memory_space<smem>>
    %c3_i32_110 = arith.constant 3 : i32
    %c0_i32_111 = arith.constant 0 : i32
    %165 = tpu.memref_slice %arg5[%164, %c0_i32_111] : memref<64x128xf32, #tpu.memory_space<any>> -> memref<1x128xf32, #tpu.memory_space<any>>
    %c5_i32_112 = arith.constant 5 : i32
    %c0_i32_113 = arith.constant 0 : i32
    %166 = tpu.memref_slice %arg11[%c5_i32_112, %c0_i32_113] : memref<8x128xf32, #tpu.memory_space<vmem>> -> memref<1x128xf32, #tpu.memory_space<vmem>>
    %167 = tpu.memref_slice %arg12[%c3_i32_110] : memref<4x!tpu.dma_semaphore, #tpu.memory_space<semaphore_mem>> -> memref<1x!tpu.dma_semaphore, #tpu.memory_space<semaphore_mem>>
    %168 = tpu.memref_squeeze %167 : memref<1x!tpu.dma_semaphore, #tpu.memory_space<semaphore_mem>> -> memref<!tpu.dma_semaphore, #tpu.memory_space<semaphore_mem>>
    tpu.enqueue_dma source(%165 : memref<1x128xf32, #tpu.memory_space<any>>) target(%166 : memref<1x128xf32, #tpu.memory_space<vmem>>) target_semaphore(%168 : memref<!tpu.dma_semaphore, #tpu.memory_space<semaphore_mem>>)
    %c6_i32 = arith.constant 6 : i32
    %169 = arith.addi %0, %c6_i32 : i32
    %170 = arith.index_cast %169 : i32 to index
    %171 = memref.load %arg1[%170] : memref<8xi32, #tpu.memory_space<smem>>
    %c0_i32_114 = arith.constant 0 : i32
    %c0_i32_115 = arith.constant 0 : i32
    %172 = tpu.memref_slice %arg5[%171, %c0_i32_115] : memref<64x128xf32, #tpu.memory_space<any>> -> memref<1x128xf32, #tpu.memory_space<any>>
    %c6_i32_116 = arith.constant 6 : i32
    %c0_i32_117 = arith.constant 0 : i32
    %173 = tpu.memref_slice %arg8[%c6_i32_116, %c0_i32_117] : memref<8x128xf32, #tpu.memory_space<vmem>> -> memref<1x128xf32, #tpu.memory_space<vmem>>
    %174 = tpu.memref_slice %arg12[%c0_i32_114] : memref<4x!tpu.dma_semaphore, #tpu.memory_space<semaphore_mem>> -> memref<1x!tpu.dma_semaphore, #tpu.memory_space<semaphore_mem>>
    %175 = tpu.memref_squeeze %174 : memref<1x!tpu.dma_semaphore, #tpu.memory_space<semaphore_mem>> -> memref<!tpu.dma_semaphore, #tpu.memory_space<semaphore_mem>>
    tpu.enqueue_dma source(%172 : memref<1x128xf32, #tpu.memory_space<any>>) target(%173 : memref<1x128xf32, #tpu.memory_space<vmem>>) target_semaphore(%175 : memref<!tpu.dma_semaphore, #tpu.memory_space<semaphore_mem>>)
    %c6_i32_118 = arith.constant 6 : i32
    %176 = arith.addi %0, %c6_i32_118 : i32
    %177 = arith.index_cast %176 : i32 to index
    %178 = memref.load %arg2[%177] : memref<8xi32, #tpu.memory_space<smem>>
    %c1_i32_119 = arith.constant 1 : i32
    %c0_i32_120 = arith.constant 0 : i32
    %179 = tpu.memref_slice %arg6[%178, %c0_i32_120] : memref<16x128xf32, #tpu.memory_space<any>> -> memref<1x128xf32, #tpu.memory_space<any>>
    %c6_i32_121 = arith.constant 6 : i32
    %c0_i32_122 = arith.constant 0 : i32
    %180 = tpu.memref_slice %arg9[%c6_i32_121, %c0_i32_122] : memref<8x128xf32, #tpu.memory_space<vmem>> -> memref<1x128xf32, #tpu.memory_space<vmem>>
    %181 = tpu.memref_slice %arg12[%c1_i32_119] : memref<4x!tpu.dma_semaphore, #tpu.memory_space<semaphore_mem>> -> memref<1x!tpu.dma_semaphore, #tpu.memory_space<semaphore_mem>>
    %182 = tpu.memref_squeeze %181 : memref<1x!tpu.dma_semaphore, #tpu.memory_space<semaphore_mem>> -> memref<!tpu.dma_semaphore, #tpu.memory_space<semaphore_mem>>
    tpu.enqueue_dma source(%179 : memref<1x128xf32, #tpu.memory_space<any>>) target(%180 : memref<1x128xf32, #tpu.memory_space<vmem>>) target_semaphore(%182 : memref<!tpu.dma_semaphore, #tpu.memory_space<semaphore_mem>>)
    %c6_i32_123 = arith.constant 6 : i32
    %183 = arith.addi %0, %c6_i32_123 : i32
    %184 = arith.index_cast %183 : i32 to index
    %185 = memref.load %arg3[%184] : memref<8xi32, #tpu.memory_space<smem>>
    %c2_i32_124 = arith.constant 2 : i32
    %c0_i32_125 = arith.constant 0 : i32
    %186 = tpu.memref_slice %arg5[%185, %c0_i32_125] : memref<64x128xf32, #tpu.memory_space<any>> -> memref<1x128xf32, #tpu.memory_space<any>>
    %c6_i32_126 = arith.constant 6 : i32
    %c0_i32_127 = arith.constant 0 : i32
    %187 = tpu.memref_slice %arg10[%c6_i32_126, %c0_i32_127] : memref<8x128xf32, #tpu.memory_space<vmem>> -> memref<1x128xf32, #tpu.memory_space<vmem>>
    %188 = tpu.memref_slice %arg12[%c2_i32_124] : memref<4x!tpu.dma_semaphore, #tpu.memory_space<semaphore_mem>> -> memref<1x!tpu.dma_semaphore, #tpu.memory_space<semaphore_mem>>
    %189 = tpu.memref_squeeze %188 : memref<1x!tpu.dma_semaphore, #tpu.memory_space<semaphore_mem>> -> memref<!tpu.dma_semaphore, #tpu.memory_space<semaphore_mem>>
    tpu.enqueue_dma source(%186 : memref<1x128xf32, #tpu.memory_space<any>>) target(%187 : memref<1x128xf32, #tpu.memory_space<vmem>>) target_semaphore(%189 : memref<!tpu.dma_semaphore, #tpu.memory_space<semaphore_mem>>)
    %c6_i32_128 = arith.constant 6 : i32
    %190 = arith.addi %0, %c6_i32_128 : i32
    %191 = arith.index_cast %190 : i32 to index
    %192 = memref.load %arg4[%191] : memref<8xi32, #tpu.memory_space<smem>>
    %c3_i32_129 = arith.constant 3 : i32
    %c0_i32_130 = arith.constant 0 : i32
    %193 = tpu.memref_slice %arg5[%192, %c0_i32_130] : memref<64x128xf32, #tpu.memory_space<any>> -> memref<1x128xf32, #tpu.memory_space<any>>
    %c6_i32_131 = arith.constant 6 : i32
    %c0_i32_132 = arith.constant 0 : i32
    %194 = tpu.memref_slice %arg11[%c6_i32_131, %c0_i32_132] : memref<8x128xf32, #tpu.memory_space<vmem>> -> memref<1x128xf32, #tpu.memory_space<vmem>>
    %195 = tpu.memref_slice %arg12[%c3_i32_129] : memref<4x!tpu.dma_semaphore, #tpu.memory_space<semaphore_mem>> -> memref<1x!tpu.dma_semaphore, #tpu.memory_space<semaphore_mem>>
    %196 = tpu.memref_squeeze %195 : memref<1x!tpu.dma_semaphore, #tpu.memory_space<semaphore_mem>> -> memref<!tpu.dma_semaphore, #tpu.memory_space<semaphore_mem>>
    tpu.enqueue_dma source(%193 : memref<1x128xf32, #tpu.memory_space<any>>) target(%194 : memref<1x128xf32, #tpu.memory_space<vmem>>) target_semaphore(%196 : memref<!tpu.dma_semaphore, #tpu.memory_space<semaphore_mem>>)
    %c7_i32 = arith.constant 7 : i32
    %197 = arith.addi %0, %c7_i32 : i32
    %198 = arith.index_cast %197 : i32 to index
    %199 = memref.load %arg1[%198] : memref<8xi32, #tpu.memory_space<smem>>
    %c0_i32_133 = arith.constant 0 : i32
    %c0_i32_134 = arith.constant 0 : i32
    %200 = tpu.memref_slice %arg5[%199, %c0_i32_134] : memref<64x128xf32, #tpu.memory_space<any>> -> memref<1x128xf32, #tpu.memory_space<any>>
    %c7_i32_135 = arith.constant 7 : i32
    %c0_i32_136 = arith.constant 0 : i32
    %201 = tpu.memref_slice %arg8[%c7_i32_135, %c0_i32_136] : memref<8x128xf32, #tpu.memory_space<vmem>> -> memref<1x128xf32, #tpu.memory_space<vmem>>
    %202 = tpu.memref_slice %arg12[%c0_i32_133] : memref<4x!tpu.dma_semaphore, #tpu.memory_space<semaphore_mem>> -> memref<1x!tpu.dma_semaphore, #tpu.memory_space<semaphore_mem>>
    %203 = tpu.memref_squeeze %202 : memref<1x!tpu.dma_semaphore, #tpu.memory_space<semaphore_mem>> -> memref<!tpu.dma_semaphore, #tpu.memory_space<semaphore_mem>>
    tpu.enqueue_dma source(%200 : memref<1x128xf32, #tpu.memory_space<any>>) target(%201 : memref<1x128xf32, #tpu.memory_space<vmem>>) target_semaphore(%203 : memref<!tpu.dma_semaphore, #tpu.memory_space<semaphore_mem>>)
    %c7_i32_137 = arith.constant 7 : i32
    %204 = arith.addi %0, %c7_i32_137 : i32
    %205 = arith.index_cast %204 : i32 to index
    %206 = memref.load %arg2[%205] : memref<8xi32, #tpu.memory_space<smem>>
    %c1_i32_138 = arith.constant 1 : i32
    %c0_i32_139 = arith.constant 0 : i32
    %207 = tpu.memref_slice %arg6[%206, %c0_i32_139] : memref<16x128xf32, #tpu.memory_space<any>> -> memref<1x128xf32, #tpu.memory_space<any>>
    %c7_i32_140 = arith.constant 7 : i32
    %c0_i32_141 = arith.constant 0 : i32
    %208 = tpu.memref_slice %arg9[%c7_i32_140, %c0_i32_141] : memref<8x128xf32, #tpu.memory_space<vmem>> -> memref<1x128xf32, #tpu.memory_space<vmem>>
    %209 = tpu.memref_slice %arg12[%c1_i32_138] : memref<4x!tpu.dma_semaphore, #tpu.memory_space<semaphore_mem>> -> memref<1x!tpu.dma_semaphore, #tpu.memory_space<semaphore_mem>>
    %210 = tpu.memref_squeeze %209 : memref<1x!tpu.dma_semaphore, #tpu.memory_space<semaphore_mem>> -> memref<!tpu.dma_semaphore, #tpu.memory_space<semaphore_mem>>
    tpu.enqueue_dma source(%207 : memref<1x128xf32, #tpu.memory_space<any>>) target(%208 : memref<1x128xf32, #tpu.memory_space<vmem>>) target_semaphore(%210 : memref<!tpu.dma_semaphore, #tpu.memory_space<semaphore_mem>>)
    %c7_i32_142 = arith.constant 7 : i32
    %211 = arith.addi %0, %c7_i32_142 : i32
    %212 = arith.index_cast %211 : i32 to index
    %213 = memref.load %arg3[%212] : memref<8xi32, #tpu.memory_space<smem>>
    %c2_i32_143 = arith.constant 2 : i32
    %c0_i32_144 = arith.constant 0 : i32
    %214 = tpu.memref_slice %arg5[%213, %c0_i32_144] : memref<64x128xf32, #tpu.memory_space<any>> -> memref<1x128xf32, #tpu.memory_space<any>>
    %c7_i32_145 = arith.constant 7 : i32
    %c0_i32_146 = arith.constant 0 : i32
    %215 = tpu.memref_slice %arg10[%c7_i32_145, %c0_i32_146] : memref<8x128xf32, #tpu.memory_space<vmem>> -> memref<1x128xf32, #tpu.memory_space<vmem>>
    %216 = tpu.memref_slice %arg12[%c2_i32_143] : memref<4x!tpu.dma_semaphore, #tpu.memory_space<semaphore_mem>> -> memref<1x!tpu.dma_semaphore, #tpu.memory_space<semaphore_mem>>
    %217 = tpu.memref_squeeze %216 : memref<1x!tpu.dma_semaphore, #tpu.memory_space<semaphore_mem>> -> memref<!tpu.dma_semaphore, #tpu.memory_space<semaphore_mem>>
    tpu.enqueue_dma source(%214 : memref<1x128xf32, #tpu.memory_space<any>>) target(%215 : memref<1x128xf32, #tpu.memory_space<vmem>>) target_semaphore(%217 : memref<!tpu.dma_semaphore, #tpu.memory_space<semaphore_mem>>)
    %c7_i32_147 = arith.constant 7 : i32
    %218 = arith.addi %0, %c7_i32_147 : i32
    %219 = arith.index_cast %218 : i32 to index
    %220 = memref.load %arg4[%219] : memref<8xi32, #tpu.memory_space<smem>>
    %c3_i32_148 = arith.constant 3 : i32
    %c0_i32_149 = arith.constant 0 : i32
    %221 = tpu.memref_slice %arg5[%220, %c0_i32_149] : memref<64x128xf32, #tpu.memory_space<any>> -> memref<1x128xf32, #tpu.memory_space<any>>
    %c7_i32_150 = arith.constant 7 : i32
    %c0_i32_151 = arith.constant 0 : i32
    %222 = tpu.memref_slice %arg11[%c7_i32_150, %c0_i32_151] : memref<8x128xf32, #tpu.memory_space<vmem>> -> memref<1x128xf32, #tpu.memory_space<vmem>>
    %223 = tpu.memref_slice %arg12[%c3_i32_148] : memref<4x!tpu.dma_semaphore, #tpu.memory_space<semaphore_mem>> -> memref<1x!tpu.dma_semaphore, #tpu.memory_space<semaphore_mem>>
    %224 = tpu.memref_squeeze %223 : memref<1x!tpu.dma_semaphore, #tpu.memory_space<semaphore_mem>> -> memref<!tpu.dma_semaphore, #tpu.memory_space<semaphore_mem>>
    tpu.enqueue_dma source(%221 : memref<1x128xf32, #tpu.memory_space<any>>) target(%222 : memref<1x128xf32, #tpu.memory_space<vmem>>) target_semaphore(%224 : memref<!tpu.dma_semaphore, #tpu.memory_space<semaphore_mem>>)
    %c0_i32_152 = arith.constant 0 : i32
    %c0_i32_153 = arith.constant 0 : i32
    %c0_i32_154 = arith.constant 0 : i32
    %225 = tpu.memref_slice %arg5[%c0_i32_153, %c0_i32_154] : memref<64x128xf32, #tpu.memory_space<any>> -> memref<1x128xf32, #tpu.memory_space<any>>
    %c0_i32_155 = arith.constant 0 : i32
    %c0_i32_156 = arith.constant 0 : i32
    %226 = tpu.memref_slice %arg8[%c0_i32_155, %c0_i32_156] : memref<8x128xf32, #tpu.memory_space<vmem>> -> memref<1x128xf32, #tpu.memory_space<vmem>>
    %227 = tpu.memref_slice %arg12[%c0_i32_152] : memref<4x!tpu.dma_semaphore, #tpu.memory_space<semaphore_mem>> -> memref<1x!tpu.dma_semaphore, #tpu.memory_space<semaphore_mem>>
    %228 = tpu.memref_squeeze %227 : memref<1x!tpu.dma_semaphore, #tpu.memory_space<semaphore_mem>> -> memref<!tpu.dma_semaphore, #tpu.memory_space<semaphore_mem>>
    tpu.wait_dma2 semaphore(%228 : memref<!tpu.dma_semaphore, #tpu.memory_space<semaphore_mem>>) src(%225 : memref<1x128xf32, #tpu.memory_space<any>>) dst(%226 : memref<1x128xf32, #tpu.memory_space<vmem>>)
    %c1_i32_157 = arith.constant 1 : i32
    %c0_i32_158 = arith.constant 0 : i32
    %c0_i32_159 = arith.constant 0 : i32
    %229 = tpu.memref_slice %arg6[%c0_i32_158, %c0_i32_159] : memref<16x128xf32, #tpu.memory_space<any>> -> memref<1x128xf32, #tpu.memory_space<any>>
    %c0_i32_160 = arith.constant 0 : i32
    %c0_i32_161 = arith.constant 0 : i32
    %230 = tpu.memref_slice %arg9[%c0_i32_160, %c0_i32_161] : memref<8x128xf32, #tpu.memory_space<vmem>> -> memref<1x128xf32, #tpu.memory_space<vmem>>
    %231 = tpu.memref_slice %arg12[%c1_i32_157] : memref<4x!tpu.dma_semaphore, #tpu.memory_space<semaphore_mem>> -> memref<1x!tpu.dma_semaphore, #tpu.memory_space<semaphore_mem>>
    %232 = tpu.memref_squeeze %231 : memref<1x!tpu.dma_semaphore, #tpu.memory_space<semaphore_mem>> -> memref<!tpu.dma_semaphore, #tpu.memory_space<semaphore_mem>>
    tpu.wait_dma2 semaphore(%232 : memref<!tpu.dma_semaphore, #tpu.memory_space<semaphore_mem>>) src(%229 : memref<1x128xf32, #tpu.memory_space<any>>) dst(%230 : memref<1x128xf32, #tpu.memory_space<vmem>>)
    %c2_i32_162 = arith.constant 2 : i32
    %c0_i32_163 = arith.constant 0 : i32
    %c0_i32_164 = arith.constant 0 : i32
    %233 = tpu.memref_slice %arg5[%c0_i32_163, %c0_i32_164] : memref<64x128xf32, #tpu.memory_space<any>> -> memref<1x128xf32, #tpu.memory_space<any>>
    %c0_i32_165 = arith.constant 0 : i32
    %c0_i32_166 = arith.constant 0 : i32
    %234 = tpu.memref_slice %arg10[%c0_i32_165, %c0_i32_166] : memref<8x128xf32, #tpu.memory_space<vmem>> -> memref<1x128xf32, #tpu.memory_space<vmem>>
    %235 = tpu.memref_slice %arg12[%c2_i32_162] : memref<4x!tpu.dma_semaphore, #tpu.memory_space<semaphore_mem>> -> memref<1x!tpu.dma_semaphore, #tpu.memory_space<semaphore_mem>>
    %236 = tpu.memref_squeeze %235 : memref<1x!tpu.dma_semaphore, #tpu.memory_space<semaphore_mem>> -> memref<!tpu.dma_semaphore, #tpu.memory_space<semaphore_mem>>
    tpu.wait_dma2 semaphore(%236 : memref<!tpu.dma_semaphore, #tpu.memory_space<semaphore_mem>>) src(%233 : memref<1x128xf32, #tpu.memory_space<any>>) dst(%234 : memref<1x128xf32, #tpu.memory_space<vmem>>)
    %c3_i32_167 = arith.constant 3 : i32
    %c0_i32_168 = arith.constant 0 : i32
    %c0_i32_169 = arith.constant 0 : i32
    %237 = tpu.memref_slice %arg5[%c0_i32_168, %c0_i32_169] : memref<64x128xf32, #tpu.memory_space<any>> -> memref<1x128xf32, #tpu.memory_space<any>>
    %c0_i32_170 = arith.constant 0 : i32
    %c0_i32_171 = arith.constant 0 : i32
    %238 = tpu.memref_slice %arg11[%c0_i32_170, %c0_i32_171] : memref<8x128xf32, #tpu.memory_space<vmem>> -> memref<1x128xf32, #tpu.memory_space<vmem>>
    %239 = tpu.memref_slice %arg12[%c3_i32_167] : memref<4x!tpu.dma_semaphore, #tpu.memory_space<semaphore_mem>> -> memref<1x!tpu.dma_semaphore, #tpu.memory_space<semaphore_mem>>
    %240 = tpu.memref_squeeze %239 : memref<1x!tpu.dma_semaphore, #tpu.memory_space<semaphore_mem>> -> memref<!tpu.dma_semaphore, #tpu.memory_space<semaphore_mem>>
    tpu.wait_dma2 semaphore(%240 : memref<!tpu.dma_semaphore, #tpu.memory_space<semaphore_mem>>) src(%237 : memref<1x128xf32, #tpu.memory_space<any>>) dst(%238 : memref<1x128xf32, #tpu.memory_space<vmem>>)
    %c0_i32_172 = arith.constant 0 : i32
    %c0_i32_173 = arith.constant 0 : i32
    %c0_i32_174 = arith.constant 0 : i32
    %241 = tpu.memref_slice %arg5[%c0_i32_173, %c0_i32_174] : memref<64x128xf32, #tpu.memory_space<any>> -> memref<1x128xf32, #tpu.memory_space<any>>
    %c1_i32_175 = arith.constant 1 : i32
    %c0_i32_176 = arith.constant 0 : i32
    %242 = tpu.memref_slice %arg8[%c1_i32_175, %c0_i32_176] : memref<8x128xf32, #tpu.memory_space<vmem>> -> memref<1x128xf32, #tpu.memory_space<vmem>>
    %243 = tpu.memref_slice %arg12[%c0_i32_172] : memref<4x!tpu.dma_semaphore, #tpu.memory_space<semaphore_mem>> -> memref<1x!tpu.dma_semaphore, #tpu.memory_space<semaphore_mem>>
    %244 = tpu.memref_squeeze %243 : memref<1x!tpu.dma_semaphore, #tpu.memory_space<semaphore_mem>> -> memref<!tpu.dma_semaphore, #tpu.memory_space<semaphore_mem>>
    tpu.wait_dma2 semaphore(%244 : memref<!tpu.dma_semaphore, #tpu.memory_space<semaphore_mem>>) src(%241 : memref<1x128xf32, #tpu.memory_space<any>>) dst(%242 : memref<1x128xf32, #tpu.memory_space<vmem>>)
    %c1_i32_177 = arith.constant 1 : i32
    %c0_i32_178 = arith.constant 0 : i32
    %c0_i32_179 = arith.constant 0 : i32
    %245 = tpu.memref_slice %arg6[%c0_i32_178, %c0_i32_179] : memref<16x128xf32, #tpu.memory_space<any>> -> memref<1x128xf32, #tpu.memory_space<any>>
    %c1_i32_180 = arith.constant 1 : i32
    %c0_i32_181 = arith.constant 0 : i32
    %246 = tpu.memref_slice %arg9[%c1_i32_180, %c0_i32_181] : memref<8x128xf32, #tpu.memory_space<vmem>> -> memref<1x128xf32, #tpu.memory_space<vmem>>
    %247 = tpu.memref_slice %arg12[%c1_i32_177] : memref<4x!tpu.dma_semaphore, #tpu.memory_space<semaphore_mem>> -> memref<1x!tpu.dma_semaphore, #tpu.memory_space<semaphore_mem>>
    %248 = tpu.memref_squeeze %247 : memref<1x!tpu.dma_semaphore, #tpu.memory_space<semaphore_mem>> -> memref<!tpu.dma_semaphore, #tpu.memory_space<semaphore_mem>>
    tpu.wait_dma2 semaphore(%248 : memref<!tpu.dma_semaphore, #tpu.memory_space<semaphore_mem>>) src(%245 : memref<1x128xf32, #tpu.memory_space<any>>) dst(%246 : memref<1x128xf32, #tpu.memory_space<vmem>>)
    %c2_i32_182 = arith.constant 2 : i32
    %c0_i32_183 = arith.constant 0 : i32
    %c0_i32_184 = arith.constant 0 : i32
    %249 = tpu.memref_slice %arg5[%c0_i32_183, %c0_i32_184] : memref<64x128xf32, #tpu.memory_space<any>> -> memref<1x128xf32, #tpu.memory_space<any>>
    %c1_i32_185 = arith.constant 1 : i32
    %c0_i32_186 = arith.constant 0 : i32
    %250 = tpu.memref_slice %arg10[%c1_i32_185, %c0_i32_186] : memref<8x128xf32, #tpu.memory_space<vmem>> -> memref<1x128xf32, #tpu.memory_space<vmem>>
    %251 = tpu.memref_slice %arg12[%c2_i32_182] : memref<4x!tpu.dma_semaphore, #tpu.memory_space<semaphore_mem>> -> memref<1x!tpu.dma_semaphore, #tpu.memory_space<semaphore_mem>>
    %252 = tpu.memref_squeeze %251 : memref<1x!tpu.dma_semaphore, #tpu.memory_space<semaphore_mem>> -> memref<!tpu.dma_semaphore, #tpu.memory_space<semaphore_mem>>
    tpu.wait_dma2 semaphore(%252 : memref<!tpu.dma_semaphore, #tpu.memory_space<semaphore_mem>>) src(%249 : memref<1x128xf32, #tpu.memory_space<any>>) dst(%250 : memref<1x128xf32, #tpu.memory_space<vmem>>)
    %c3_i32_187 = arith.constant 3 : i32
    %c0_i32_188 = arith.constant 0 : i32
    %c0_i32_189 = arith.constant 0 : i32
    %253 = tpu.memref_slice %arg5[%c0_i32_188, %c0_i32_189] : memref<64x128xf32, #tpu.memory_space<any>> -> memref<1x128xf32, #tpu.memory_space<any>>
    %c1_i32_190 = arith.constant 1 : i32
    %c0_i32_191 = arith.constant 0 : i32
    %254 = tpu.memref_slice %arg11[%c1_i32_190, %c0_i32_191] : memref<8x128xf32, #tpu.memory_space<vmem>> -> memref<1x128xf32, #tpu.memory_space<vmem>>
    %255 = tpu.memref_slice %arg12[%c3_i32_187] : memref<4x!tpu.dma_semaphore, #tpu.memory_space<semaphore_mem>> -> memref<1x!tpu.dma_semaphore, #tpu.memory_space<semaphore_mem>>
    %256 = tpu.memref_squeeze %255 : memref<1x!tpu.dma_semaphore, #tpu.memory_space<semaphore_mem>> -> memref<!tpu.dma_semaphore, #tpu.memory_space<semaphore_mem>>
    tpu.wait_dma2 semaphore(%256 : memref<!tpu.dma_semaphore, #tpu.memory_space<semaphore_mem>>) src(%253 : memref<1x128xf32, #tpu.memory_space<any>>) dst(%254 : memref<1x128xf32, #tpu.memory_space<vmem>>)
    %c0_i32_192 = arith.constant 0 : i32
    %c0_i32_193 = arith.constant 0 : i32
    %c0_i32_194 = arith.constant 0 : i32
    %257 = tpu.memref_slice %arg5[%c0_i32_193, %c0_i32_194] : memref<64x128xf32, #tpu.memory_space<any>> -> memref<1x128xf32, #tpu.memory_space<any>>
    %c2_i32_195 = arith.constant 2 : i32
    %c0_i32_196 = arith.constant 0 : i32
    %258 = tpu.memref_slice %arg8[%c2_i32_195, %c0_i32_196] : memref<8x128xf32, #tpu.memory_space<vmem>> -> memref<1x128xf32, #tpu.memory_space<vmem>>
    %259 = tpu.memref_slice %arg12[%c0_i32_192] : memref<4x!tpu.dma_semaphore, #tpu.memory_space<semaphore_mem>> -> memref<1x!tpu.dma_semaphore, #tpu.memory_space<semaphore_mem>>
    %260 = tpu.memref_squeeze %259 : memref<1x!tpu.dma_semaphore, #tpu.memory_space<semaphore_mem>> -> memref<!tpu.dma_semaphore, #tpu.memory_space<semaphore_mem>>
    tpu.wait_dma2 semaphore(%260 : memref<!tpu.dma_semaphore, #tpu.memory_space<semaphore_mem>>) src(%257 : memref<1x128xf32, #tpu.memory_space<any>>) dst(%258 : memref<1x128xf32, #tpu.memory_space<vmem>>)
    %c1_i32_197 = arith.constant 1 : i32
    %c0_i32_198 = arith.constant 0 : i32
    %c0_i32_199 = arith.constant 0 : i32
    %261 = tpu.memref_slice %arg6[%c0_i32_198, %c0_i32_199] : memref<16x128xf32, #tpu.memory_space<any>> -> memref<1x128xf32, #tpu.memory_space<any>>
    %c2_i32_200 = arith.constant 2 : i32
    %c0_i32_201 = arith.constant 0 : i32
    %262 = tpu.memref_slice %arg9[%c2_i32_200, %c0_i32_201] : memref<8x128xf32, #tpu.memory_space<vmem>> -> memref<1x128xf32, #tpu.memory_space<vmem>>
    %263 = tpu.memref_slice %arg12[%c1_i32_197] : memref<4x!tpu.dma_semaphore, #tpu.memory_space<semaphore_mem>> -> memref<1x!tpu.dma_semaphore, #tpu.memory_space<semaphore_mem>>
    %264 = tpu.memref_squeeze %263 : memref<1x!tpu.dma_semaphore, #tpu.memory_space<semaphore_mem>> -> memref<!tpu.dma_semaphore, #tpu.memory_space<semaphore_mem>>
    tpu.wait_dma2 semaphore(%264 : memref<!tpu.dma_semaphore, #tpu.memory_space<semaphore_mem>>) src(%261 : memref<1x128xf32, #tpu.memory_space<any>>) dst(%262 : memref<1x128xf32, #tpu.memory_space<vmem>>)
    %c2_i32_202 = arith.constant 2 : i32
    %c0_i32_203 = arith.constant 0 : i32
    %c0_i32_204 = arith.constant 0 : i32
    %265 = tpu.memref_slice %arg5[%c0_i32_203, %c0_i32_204] : memref<64x128xf32, #tpu.memory_space<any>> -> memref<1x128xf32, #tpu.memory_space<any>>
    %c2_i32_205 = arith.constant 2 : i32
    %c0_i32_206 = arith.constant 0 : i32
    %266 = tpu.memref_slice %arg10[%c2_i32_205, %c0_i32_206] : memref<8x128xf32, #tpu.memory_space<vmem>> -> memref<1x128xf32, #tpu.memory_space<vmem>>
    %267 = tpu.memref_slice %arg12[%c2_i32_202] : memref<4x!tpu.dma_semaphore, #tpu.memory_space<semaphore_mem>> -> memref<1x!tpu.dma_semaphore, #tpu.memory_space<semaphore_mem>>
    %268 = tpu.memref_squeeze %267 : memref<1x!tpu.dma_semaphore, #tpu.memory_space<semaphore_mem>> -> memref<!tpu.dma_semaphore, #tpu.memory_space<semaphore_mem>>
    tpu.wait_dma2 semaphore(%268 : memref<!tpu.dma_semaphore, #tpu.memory_space<semaphore_mem>>) src(%265 : memref<1x128xf32, #tpu.memory_space<any>>) dst(%266 : memref<1x128xf32, #tpu.memory_space<vmem>>)
    %c3_i32_207 = arith.constant 3 : i32
    %c0_i32_208 = arith.constant 0 : i32
    %c0_i32_209 = arith.constant 0 : i32
    %269 = tpu.memref_slice %arg5[%c0_i32_208, %c0_i32_209] : memref<64x128xf32, #tpu.memory_space<any>> -> memref<1x128xf32, #tpu.memory_space<any>>
    %c2_i32_210 = arith.constant 2 : i32
    %c0_i32_211 = arith.constant 0 : i32
    %270 = tpu.memref_slice %arg11[%c2_i32_210, %c0_i32_211] : memref<8x128xf32, #tpu.memory_space<vmem>> -> memref<1x128xf32, #tpu.memory_space<vmem>>
    %271 = tpu.memref_slice %arg12[%c3_i32_207] : memref<4x!tpu.dma_semaphore, #tpu.memory_space<semaphore_mem>> -> memref<1x!tpu.dma_semaphore, #tpu.memory_space<semaphore_mem>>
    %272 = tpu.memref_squeeze %271 : memref<1x!tpu.dma_semaphore, #tpu.memory_space<semaphore_mem>> -> memref<!tpu.dma_semaphore, #tpu.memory_space<semaphore_mem>>
    tpu.wait_dma2 semaphore(%272 : memref<!tpu.dma_semaphore, #tpu.memory_space<semaphore_mem>>) src(%269 : memref<1x128xf32, #tpu.memory_space<any>>) dst(%270 : memref<1x128xf32, #tpu.memory_space<vmem>>)
    %c0_i32_212 = arith.constant 0 : i32
    %c0_i32_213 = arith.constant 0 : i32
    %c0_i32_214 = arith.constant 0 : i32
    %273 = tpu.memref_slice %arg5[%c0_i32_213, %c0_i32_214] : memref<64x128xf32, #tpu.memory_space<any>> -> memref<1x128xf32, #tpu.memory_space<any>>
    %c3_i32_215 = arith.constant 3 : i32
    %c0_i32_216 = arith.constant 0 : i32
    %274 = tpu.memref_slice %arg8[%c3_i32_215, %c0_i32_216] : memref<8x128xf32, #tpu.memory_space<vmem>> -> memref<1x128xf32, #tpu.memory_space<vmem>>
    %275 = tpu.memref_slice %arg12[%c0_i32_212] : memref<4x!tpu.dma_semaphore, #tpu.memory_space<semaphore_mem>> -> memref<1x!tpu.dma_semaphore, #tpu.memory_space<semaphore_mem>>
    %276 = tpu.memref_squeeze %275 : memref<1x!tpu.dma_semaphore, #tpu.memory_space<semaphore_mem>> -> memref<!tpu.dma_semaphore, #tpu.memory_space<semaphore_mem>>
    tpu.wait_dma2 semaphore(%276 : memref<!tpu.dma_semaphore, #tpu.memory_space<semaphore_mem>>) src(%273 : memref<1x128xf32, #tpu.memory_space<any>>) dst(%274 : memref<1x128xf32, #tpu.memory_space<vmem>>)
    %c1_i32_217 = arith.constant 1 : i32
    %c0_i32_218 = arith.constant 0 : i32
    %c0_i32_219 = arith.constant 0 : i32
    %277 = tpu.memref_slice %arg6[%c0_i32_218, %c0_i32_219] : memref<16x128xf32, #tpu.memory_space<any>> -> memref<1x128xf32, #tpu.memory_space<any>>
    %c3_i32_220 = arith.constant 3 : i32
    %c0_i32_221 = arith.constant 0 : i32
    %278 = tpu.memref_slice %arg9[%c3_i32_220, %c0_i32_221] : memref<8x128xf32, #tpu.memory_space<vmem>> -> memref<1x128xf32, #tpu.memory_space<vmem>>
    %279 = tpu.memref_slice %arg12[%c1_i32_217] : memref<4x!tpu.dma_semaphore, #tpu.memory_space<semaphore_mem>> -> memref<1x!tpu.dma_semaphore, #tpu.memory_space<semaphore_mem>>
    %280 = tpu.memref_squeeze %279 : memref<1x!tpu.dma_semaphore, #tpu.memory_space<semaphore_mem>> -> memref<!tpu.dma_semaphore, #tpu.memory_space<semaphore_mem>>
    tpu.wait_dma2 semaphore(%280 : memref<!tpu.dma_semaphore, #tpu.memory_space<semaphore_mem>>) src(%277 : memref<1x128xf32, #tpu.memory_space<any>>) dst(%278 : memref<1x128xf32, #tpu.memory_space<vmem>>)
    %c2_i32_222 = arith.constant 2 : i32
    %c0_i32_223 = arith.constant 0 : i32
    %c0_i32_224 = arith.constant 0 : i32
    %281 = tpu.memref_slice %arg5[%c0_i32_223, %c0_i32_224] : memref<64x128xf32, #tpu.memory_space<any>> -> memref<1x128xf32, #tpu.memory_space<any>>
    %c3_i32_225 = arith.constant 3 : i32
    %c0_i32_226 = arith.constant 0 : i32
    %282 = tpu.memref_slice %arg10[%c3_i32_225, %c0_i32_226] : memref<8x128xf32, #tpu.memory_space<vmem>> -> memref<1x128xf32, #tpu.memory_space<vmem>>
    %283 = tpu.memref_slice %arg12[%c2_i32_222] : memref<4x!tpu.dma_semaphore, #tpu.memory_space<semaphore_mem>> -> memref<1x!tpu.dma_semaphore, #tpu.memory_space<semaphore_mem>>
    %284 = tpu.memref_squeeze %283 : memref<1x!tpu.dma_semaphore, #tpu.memory_space<semaphore_mem>> -> memref<!tpu.dma_semaphore, #tpu.memory_space<semaphore_mem>>
    tpu.wait_dma2 semaphore(%284 : memref<!tpu.dma_semaphore, #tpu.memory_space<semaphore_mem>>) src(%281 : memref<1x128xf32, #tpu.memory_space<any>>) dst(%282 : memref<1x128xf32, #tpu.memory_space<vmem>>)
    %c3_i32_227 = arith.constant 3 : i32
    %c0_i32_228 = arith.constant 0 : i32
    %c0_i32_229 = arith.constant 0 : i32
    %285 = tpu.memref_slice %arg5[%c0_i32_228, %c0_i32_229] : memref<64x128xf32, #tpu.memory_space<any>> -> memref<1x128xf32, #tpu.memory_space<any>>
    %c3_i32_230 = arith.constant 3 : i32
    %c0_i32_231 = arith.constant 0 : i32
    %286 = tpu.memref_slice %arg11[%c3_i32_230, %c0_i32_231] : memref<8x128xf32, #tpu.memory_space<vmem>> -> memref<1x128xf32, #tpu.memory_space<vmem>>
    %287 = tpu.memref_slice %arg12[%c3_i32_227] : memref<4x!tpu.dma_semaphore, #tpu.memory_space<semaphore_mem>> -> memref<1x!tpu.dma_semaphore, #tpu.memory_space<semaphore_mem>>
    %288 = tpu.memref_squeeze %287 : memref<1x!tpu.dma_semaphore, #tpu.memory_space<semaphore_mem>> -> memref<!tpu.dma_semaphore, #tpu.memory_space<semaphore_mem>>
    tpu.wait_dma2 semaphore(%288 : memref<!tpu.dma_semaphore, #tpu.memory_space<semaphore_mem>>) src(%285 : memref<1x128xf32, #tpu.memory_space<any>>) dst(%286 : memref<1x128xf32, #tpu.memory_space<vmem>>)
    %c0_i32_232 = arith.constant 0 : i32
    %c0_i32_233 = arith.constant 0 : i32
    %c0_i32_234 = arith.constant 0 : i32
    %289 = tpu.memref_slice %arg5[%c0_i32_233, %c0_i32_234] : memref<64x128xf32, #tpu.memory_space<any>> -> memref<1x128xf32, #tpu.memory_space<any>>
    %c4_i32_235 = arith.constant 4 : i32
    %c0_i32_236 = arith.constant 0 : i32
    %290 = tpu.memref_slice %arg8[%c4_i32_235, %c0_i32_236] : memref<8x128xf32, #tpu.memory_space<vmem>> -> memref<1x128xf32, #tpu.memory_space<vmem>>
    %291 = tpu.memref_slice %arg12[%c0_i32_232] : memref<4x!tpu.dma_semaphore, #tpu.memory_space<semaphore_mem>> -> memref<1x!tpu.dma_semaphore, #tpu.memory_space<semaphore_mem>>
    %292 = tpu.memref_squeeze %291 : memref<1x!tpu.dma_semaphore, #tpu.memory_space<semaphore_mem>> -> memref<!tpu.dma_semaphore, #tpu.memory_space<semaphore_mem>>
    tpu.wait_dma2 semaphore(%292 : memref<!tpu.dma_semaphore, #tpu.memory_space<semaphore_mem>>) src(%289 : memref<1x128xf32, #tpu.memory_space<any>>) dst(%290 : memref<1x128xf32, #tpu.memory_space<vmem>>)
    %c1_i32_237 = arith.constant 1 : i32
    %c0_i32_238 = arith.constant 0 : i32
    %c0_i32_239 = arith.constant 0 : i32
    %293 = tpu.memref_slice %arg6[%c0_i32_238, %c0_i32_239] : memref<16x128xf32, #tpu.memory_space<any>> -> memref<1x128xf32, #tpu.memory_space<any>>
    %c4_i32_240 = arith.constant 4 : i32
    %c0_i32_241 = arith.constant 0 : i32
    %294 = tpu.memref_slice %arg9[%c4_i32_240, %c0_i32_241] : memref<8x128xf32, #tpu.memory_space<vmem>> -> memref<1x128xf32, #tpu.memory_space<vmem>>
    %295 = tpu.memref_slice %arg12[%c1_i32_237] : memref<4x!tpu.dma_semaphore, #tpu.memory_space<semaphore_mem>> -> memref<1x!tpu.dma_semaphore, #tpu.memory_space<semaphore_mem>>
    %296 = tpu.memref_squeeze %295 : memref<1x!tpu.dma_semaphore, #tpu.memory_space<semaphore_mem>> -> memref<!tpu.dma_semaphore, #tpu.memory_space<semaphore_mem>>
    tpu.wait_dma2 semaphore(%296 : memref<!tpu.dma_semaphore, #tpu.memory_space<semaphore_mem>>) src(%293 : memref<1x128xf32, #tpu.memory_space<any>>) dst(%294 : memref<1x128xf32, #tpu.memory_space<vmem>>)
    %c2_i32_242 = arith.constant 2 : i32
    %c0_i32_243 = arith.constant 0 : i32
    %c0_i32_244 = arith.constant 0 : i32
    %297 = tpu.memref_slice %arg5[%c0_i32_243, %c0_i32_244] : memref<64x128xf32, #tpu.memory_space<any>> -> memref<1x128xf32, #tpu.memory_space<any>>
    %c4_i32_245 = arith.constant 4 : i32
    %c0_i32_246 = arith.constant 0 : i32
    %298 = tpu.memref_slice %arg10[%c4_i32_245, %c0_i32_246] : memref<8x128xf32, #tpu.memory_space<vmem>> -> memref<1x128xf32, #tpu.memory_space<vmem>>
    %299 = tpu.memref_slice %arg12[%c2_i32_242] : memref<4x!tpu.dma_semaphore, #tpu.memory_space<semaphore_mem>> -> memref<1x!tpu.dma_semaphore, #tpu.memory_space<semaphore_mem>>
    %300 = tpu.memref_squeeze %299 : memref<1x!tpu.dma_semaphore, #tpu.memory_space<semaphore_mem>> -> memref<!tpu.dma_semaphore, #tpu.memory_space<semaphore_mem>>
    tpu.wait_dma2 semaphore(%300 : memref<!tpu.dma_semaphore, #tpu.memory_space<semaphore_mem>>) src(%297 : memref<1x128xf32, #tpu.memory_space<any>>) dst(%298 : memref<1x128xf32, #tpu.memory_space<vmem>>)
    %c3_i32_247 = arith.constant 3 : i32
    %c0_i32_248 = arith.constant 0 : i32
    %c0_i32_249 = arith.constant 0 : i32
    %301 = tpu.memref_slice %arg5[%c0_i32_248, %c0_i32_249] : memref<64x128xf32, #tpu.memory_space<any>> -> memref<1x128xf32, #tpu.memory_space<any>>
    %c4_i32_250 = arith.constant 4 : i32
    %c0_i32_251 = arith.constant 0 : i32
    %302 = tpu.memref_slice %arg11[%c4_i32_250, %c0_i32_251] : memref<8x128xf32, #tpu.memory_space<vmem>> -> memref<1x128xf32, #tpu.memory_space<vmem>>
    %303 = tpu.memref_slice %arg12[%c3_i32_247] : memref<4x!tpu.dma_semaphore, #tpu.memory_space<semaphore_mem>> -> memref<1x!tpu.dma_semaphore, #tpu.memory_space<semaphore_mem>>
    %304 = tpu.memref_squeeze %303 : memref<1x!tpu.dma_semaphore, #tpu.memory_space<semaphore_mem>> -> memref<!tpu.dma_semaphore, #tpu.memory_space<semaphore_mem>>
    tpu.wait_dma2 semaphore(%304 : memref<!tpu.dma_semaphore, #tpu.memory_space<semaphore_mem>>) src(%301 : memref<1x128xf32, #tpu.memory_space<any>>) dst(%302 : memref<1x128xf32, #tpu.memory_space<vmem>>)
    %c0_i32_252 = arith.constant 0 : i32
    %c0_i32_253 = arith.constant 0 : i32
    %c0_i32_254 = arith.constant 0 : i32
    %305 = tpu.memref_slice %arg5[%c0_i32_253, %c0_i32_254] : memref<64x128xf32, #tpu.memory_space<any>> -> memref<1x128xf32, #tpu.memory_space<any>>
    %c5_i32_255 = arith.constant 5 : i32
    %c0_i32_256 = arith.constant 0 : i32
    %306 = tpu.memref_slice %arg8[%c5_i32_255, %c0_i32_256] : memref<8x128xf32, #tpu.memory_space<vmem>> -> memref<1x128xf32, #tpu.memory_space<vmem>>
    %307 = tpu.memref_slice %arg12[%c0_i32_252] : memref<4x!tpu.dma_semaphore, #tpu.memory_space<semaphore_mem>> -> memref<1x!tpu.dma_semaphore, #tpu.memory_space<semaphore_mem>>
    %308 = tpu.memref_squeeze %307 : memref<1x!tpu.dma_semaphore, #tpu.memory_space<semaphore_mem>> -> memref<!tpu.dma_semaphore, #tpu.memory_space<semaphore_mem>>
    tpu.wait_dma2 semaphore(%308 : memref<!tpu.dma_semaphore, #tpu.memory_space<semaphore_mem>>) src(%305 : memref<1x128xf32, #tpu.memory_space<any>>) dst(%306 : memref<1x128xf32, #tpu.memory_space<vmem>>)
    %c1_i32_257 = arith.constant 1 : i32
    %c0_i32_258 = arith.constant 0 : i32
    %c0_i32_259 = arith.constant 0 : i32
    %309 = tpu.memref_slice %arg6[%c0_i32_258, %c0_i32_259] : memref<16x128xf32, #tpu.memory_space<any>> -> memref<1x128xf32, #tpu.memory_space<any>>
    %c5_i32_260 = arith.constant 5 : i32
    %c0_i32_261 = arith.constant 0 : i32
    %310 = tpu.memref_slice %arg9[%c5_i32_260, %c0_i32_261] : memref<8x128xf32, #tpu.memory_space<vmem>> -> memref<1x128xf32, #tpu.memory_space<vmem>>
    %311 = tpu.memref_slice %arg12[%c1_i32_257] : memref<4x!tpu.dma_semaphore, #tpu.memory_space<semaphore_mem>> -> memref<1x!tpu.dma_semaphore, #tpu.memory_space<semaphore_mem>>
    %312 = tpu.memref_squeeze %311 : memref<1x!tpu.dma_semaphore, #tpu.memory_space<semaphore_mem>> -> memref<!tpu.dma_semaphore, #tpu.memory_space<semaphore_mem>>
    tpu.wait_dma2 semaphore(%312 : memref<!tpu.dma_semaphore, #tpu.memory_space<semaphore_mem>>) src(%309 : memref<1x128xf32, #tpu.memory_space<any>>) dst(%310 : memref<1x128xf32, #tpu.memory_space<vmem>>)
    %c2_i32_262 = arith.constant 2 : i32
    %c0_i32_263 = arith.constant 0 : i32
    %c0_i32_264 = arith.constant 0 : i32
    %313 = tpu.memref_slice %arg5[%c0_i32_263, %c0_i32_264] : memref<64x128xf32, #tpu.memory_space<any>> -> memref<1x128xf32, #tpu.memory_space<any>>
    %c5_i32_265 = arith.constant 5 : i32
    %c0_i32_266 = arith.constant 0 : i32
    %314 = tpu.memref_slice %arg10[%c5_i32_265, %c0_i32_266] : memref<8x128xf32, #tpu.memory_space<vmem>> -> memref<1x128xf32, #tpu.memory_space<vmem>>
    %315 = tpu.memref_slice %arg12[%c2_i32_262] : memref<4x!tpu.dma_semaphore, #tpu.memory_space<semaphore_mem>> -> memref<1x!tpu.dma_semaphore, #tpu.memory_space<semaphore_mem>>
    %316 = tpu.memref_squeeze %315 : memref<1x!tpu.dma_semaphore, #tpu.memory_space<semaphore_mem>> -> memref<!tpu.dma_semaphore, #tpu.memory_space<semaphore_mem>>
    tpu.wait_dma2 semaphore(%316 : memref<!tpu.dma_semaphore, #tpu.memory_space<semaphore_mem>>) src(%313 : memref<1x128xf32, #tpu.memory_space<any>>) dst(%314 : memref<1x128xf32, #tpu.memory_space<vmem>>)
    %c3_i32_267 = arith.constant 3 : i32
    %c0_i32_268 = arith.constant 0 : i32
    %c0_i32_269 = arith.constant 0 : i32
    %317 = tpu.memref_slice %arg5[%c0_i32_268, %c0_i32_269] : memref<64x128xf32, #tpu.memory_space<any>> -> memref<1x128xf32, #tpu.memory_space<any>>
    %c5_i32_270 = arith.constant 5 : i32
    %c0_i32_271 = arith.constant 0 : i32
    %318 = tpu.memref_slice %arg11[%c5_i32_270, %c0_i32_271] : memref<8x128xf32, #tpu.memory_space<vmem>> -> memref<1x128xf32, #tpu.memory_space<vmem>>
    %319 = tpu.memref_slice %arg12[%c3_i32_267] : memref<4x!tpu.dma_semaphore, #tpu.memory_space<semaphore_mem>> -> memref<1x!tpu.dma_semaphore, #tpu.memory_space<semaphore_mem>>
    %320 = tpu.memref_squeeze %319 : memref<1x!tpu.dma_semaphore, #tpu.memory_space<semaphore_mem>> -> memref<!tpu.dma_semaphore, #tpu.memory_space<semaphore_mem>>
    tpu.wait_dma2 semaphore(%320 : memref<!tpu.dma_semaphore, #tpu.memory_space<semaphore_mem>>) src(%317 : memref<1x128xf32, #tpu.memory_space<any>>) dst(%318 : memref<1x128xf32, #tpu.memory_space<vmem>>)
    %c0_i32_272 = arith.constant 0 : i32
    %c0_i32_273 = arith.constant 0 : i32
    %c0_i32_274 = arith.constant 0 : i32
    %321 = tpu.memref_slice %arg5[%c0_i32_273, %c0_i32_274] : memref<64x128xf32, #tpu.memory_space<any>> -> memref<1x128xf32, #tpu.memory_space<any>>
    %c6_i32_275 = arith.constant 6 : i32
    %c0_i32_276 = arith.constant 0 : i32
    %322 = tpu.memref_slice %arg8[%c6_i32_275, %c0_i32_276] : memref<8x128xf32, #tpu.memory_space<vmem>> -> memref<1x128xf32, #tpu.memory_space<vmem>>
    %323 = tpu.memref_slice %arg12[%c0_i32_272] : memref<4x!tpu.dma_semaphore, #tpu.memory_space<semaphore_mem>> -> memref<1x!tpu.dma_semaphore, #tpu.memory_space<semaphore_mem>>
    %324 = tpu.memref_squeeze %323 : memref<1x!tpu.dma_semaphore, #tpu.memory_space<semaphore_mem>> -> memref<!tpu.dma_semaphore, #tpu.memory_space<semaphore_mem>>
    tpu.wait_dma2 semaphore(%324 : memref<!tpu.dma_semaphore, #tpu.memory_space<semaphore_mem>>) src(%321 : memref<1x128xf32, #tpu.memory_space<any>>) dst(%322 : memref<1x128xf32, #tpu.memory_space<vmem>>)
    %c1_i32_277 = arith.constant 1 : i32
    %c0_i32_278 = arith.constant 0 : i32
    %c0_i32_279 = arith.constant 0 : i32
    %325 = tpu.memref_slice %arg6[%c0_i32_278, %c0_i32_279] : memref<16x128xf32, #tpu.memory_space<any>> -> memref<1x128xf32, #tpu.memory_space<any>>
    %c6_i32_280 = arith.constant 6 : i32
    %c0_i32_281 = arith.constant 0 : i32
    %326 = tpu.memref_slice %arg9[%c6_i32_280, %c0_i32_281] : memref<8x128xf32, #tpu.memory_space<vmem>> -> memref<1x128xf32, #tpu.memory_space<vmem>>
    %327 = tpu.memref_slice %arg12[%c1_i32_277] : memref<4x!tpu.dma_semaphore, #tpu.memory_space<semaphore_mem>> -> memref<1x!tpu.dma_semaphore, #tpu.memory_space<semaphore_mem>>
    %328 = tpu.memref_squeeze %327 : memref<1x!tpu.dma_semaphore, #tpu.memory_space<semaphore_mem>> -> memref<!tpu.dma_semaphore, #tpu.memory_space<semaphore_mem>>
    tpu.wait_dma2 semaphore(%328 : memref<!tpu.dma_semaphore, #tpu.memory_space<semaphore_mem>>) src(%325 : memref<1x128xf32, #tpu.memory_space<any>>) dst(%326 : memref<1x128xf32, #tpu.memory_space<vmem>>)
    %c2_i32_282 = arith.constant 2 : i32
    %c0_i32_283 = arith.constant 0 : i32
    %c0_i32_284 = arith.constant 0 : i32
    %329 = tpu.memref_slice %arg5[%c0_i32_283, %c0_i32_284] : memref<64x128xf32, #tpu.memory_space<any>> -> memref<1x128xf32, #tpu.memory_space<any>>
    %c6_i32_285 = arith.constant 6 : i32
    %c0_i32_286 = arith.constant 0 : i32
    %330 = tpu.memref_slice %arg10[%c6_i32_285, %c0_i32_286] : memref<8x128xf32, #tpu.memory_space<vmem>> -> memref<1x128xf32, #tpu.memory_space<vmem>>
    %331 = tpu.memref_slice %arg12[%c2_i32_282] : memref<4x!tpu.dma_semaphore, #tpu.memory_space<semaphore_mem>> -> memref<1x!tpu.dma_semaphore, #tpu.memory_space<semaphore_mem>>
    %332 = tpu.memref_squeeze %331 : memref<1x!tpu.dma_semaphore, #tpu.memory_space<semaphore_mem>> -> memref<!tpu.dma_semaphore, #tpu.memory_space<semaphore_mem>>
    tpu.wait_dma2 semaphore(%332 : memref<!tpu.dma_semaphore, #tpu.memory_space<semaphore_mem>>) src(%329 : memref<1x128xf32, #tpu.memory_space<any>>) dst(%330 : memref<1x128xf32, #tpu.memory_space<vmem>>)
    %c3_i32_287 = arith.constant 3 : i32
    %c0_i32_288 = arith.constant 0 : i32
    %c0_i32_289 = arith.constant 0 : i32
    %333 = tpu.memref_slice %arg5[%c0_i32_288, %c0_i32_289] : memref<64x128xf32, #tpu.memory_space<any>> -> memref<1x128xf32, #tpu.memory_space<any>>
    %c6_i32_290 = arith.constant 6 : i32
    %c0_i32_291 = arith.constant 0 : i32
    %334 = tpu.memref_slice %arg11[%c6_i32_290, %c0_i32_291] : memref<8x128xf32, #tpu.memory_space<vmem>> -> memref<1x128xf32, #tpu.memory_space<vmem>>
    %335 = tpu.memref_slice %arg12[%c3_i32_287] : memref<4x!tpu.dma_semaphore, #tpu.memory_space<semaphore_mem>> -> memref<1x!tpu.dma_semaphore, #tpu.memory_space<semaphore_mem>>
    %336 = tpu.memref_squeeze %335 : memref<1x!tpu.dma_semaphore, #tpu.memory_space<semaphore_mem>> -> memref<!tpu.dma_semaphore, #tpu.memory_space<semaphore_mem>>
    tpu.wait_dma2 semaphore(%336 : memref<!tpu.dma_semaphore, #tpu.memory_space<semaphore_mem>>) src(%333 : memref<1x128xf32, #tpu.memory_space<any>>) dst(%334 : memref<1x128xf32, #tpu.memory_space<vmem>>)
    %c0_i32_292 = arith.constant 0 : i32
    %c0_i32_293 = arith.constant 0 : i32
    %c0_i32_294 = arith.constant 0 : i32
    %337 = tpu.memref_slice %arg5[%c0_i32_293, %c0_i32_294] : memref<64x128xf32, #tpu.memory_space<any>> -> memref<1x128xf32, #tpu.memory_space<any>>
    %c7_i32_295 = arith.constant 7 : i32
    %c0_i32_296 = arith.constant 0 : i32
    %338 = tpu.memref_slice %arg8[%c7_i32_295, %c0_i32_296] : memref<8x128xf32, #tpu.memory_space<vmem>> -> memref<1x128xf32, #tpu.memory_space<vmem>>
    %339 = tpu.memref_slice %arg12[%c0_i32_292] : memref<4x!tpu.dma_semaphore, #tpu.memory_space<semaphore_mem>> -> memref<1x!tpu.dma_semaphore, #tpu.memory_space<semaphore_mem>>
    %340 = tpu.memref_squeeze %339 : memref<1x!tpu.dma_semaphore, #tpu.memory_space<semaphore_mem>> -> memref<!tpu.dma_semaphore, #tpu.memory_space<semaphore_mem>>
    tpu.wait_dma2 semaphore(%340 : memref<!tpu.dma_semaphore, #tpu.memory_space<semaphore_mem>>) src(%337 : memref<1x128xf32, #tpu.memory_space<any>>) dst(%338 : memref<1x128xf32, #tpu.memory_space<vmem>>)
    %c1_i32_297 = arith.constant 1 : i32
    %c0_i32_298 = arith.constant 0 : i32
    %c0_i32_299 = arith.constant 0 : i32
    %341 = tpu.memref_slice %arg6[%c0_i32_298, %c0_i32_299] : memref<16x128xf32, #tpu.memory_space<any>> -> memref<1x128xf32, #tpu.memory_space<any>>
    %c7_i32_300 = arith.constant 7 : i32
    %c0_i32_301 = arith.constant 0 : i32
    %342 = tpu.memref_slice %arg9[%c7_i32_300, %c0_i32_301] : memref<8x128xf32, #tpu.memory_space<vmem>> -> memref<1x128xf32, #tpu.memory_space<vmem>>
    %343 = tpu.memref_slice %arg12[%c1_i32_297] : memref<4x!tpu.dma_semaphore, #tpu.memory_space<semaphore_mem>> -> memref<1x!tpu.dma_semaphore, #tpu.memory_space<semaphore_mem>>
    %344 = tpu.memref_squeeze %343 : memref<1x!tpu.dma_semaphore, #tpu.memory_space<semaphore_mem>> -> memref<!tpu.dma_semaphore, #tpu.memory_space<semaphore_mem>>
    tpu.wait_dma2 semaphore(%344 : memref<!tpu.dma_semaphore, #tpu.memory_space<semaphore_mem>>) src(%341 : memref<1x128xf32, #tpu.memory_space<any>>) dst(%342 : memref<1x128xf32, #tpu.memory_space<vmem>>)
    %c2_i32_302 = arith.constant 2 : i32
    %c0_i32_303 = arith.constant 0 : i32
    %c0_i32_304 = arith.constant 0 : i32
    %345 = tpu.memref_slice %arg5[%c0_i32_303, %c0_i32_304] : memref<64x128xf32, #tpu.memory_space<any>> -> memref<1x128xf32, #tpu.memory_space<any>>
    %c7_i32_305 = arith.constant 7 : i32
    %c0_i32_306 = arith.constant 0 : i32
    %346 = tpu.memref_slice %arg10[%c7_i32_305, %c0_i32_306] : memref<8x128xf32, #tpu.memory_space<vmem>> -> memref<1x128xf32, #tpu.memory_space<vmem>>
    %347 = tpu.memref_slice %arg12[%c2_i32_302] : memref<4x!tpu.dma_semaphore, #tpu.memory_space<semaphore_mem>> -> memref<1x!tpu.dma_semaphore, #tpu.memory_space<semaphore_mem>>
    %348 = tpu.memref_squeeze %347 : memref<1x!tpu.dma_semaphore, #tpu.memory_space<semaphore_mem>> -> memref<!tpu.dma_semaphore, #tpu.memory_space<semaphore_mem>>
    tpu.wait_dma2 semaphore(%348 : memref<!tpu.dma_semaphore, #tpu.memory_space<semaphore_mem>>) src(%345 : memref<1x128xf32, #tpu.memory_space<any>>) dst(%346 : memref<1x128xf32, #tpu.memory_space<vmem>>)
    %c3_i32_307 = arith.constant 3 : i32
    %c0_i32_308 = arith.constant 0 : i32
    %c0_i32_309 = arith.constant 0 : i32
    %349 = tpu.memref_slice %arg5[%c0_i32_308, %c0_i32_309] : memref<64x128xf32, #tpu.memory_space<any>> -> memref<1x128xf32, #tpu.memory_space<any>>
    %c7_i32_310 = arith.constant 7 : i32
    %c0_i32_311 = arith.constant 0 : i32
    %350 = tpu.memref_slice %arg11[%c7_i32_310, %c0_i32_311] : memref<8x128xf32, #tpu.memory_space<vmem>> -> memref<1x128xf32, #tpu.memory_space<vmem>>
    %351 = tpu.memref_slice %arg12[%c3_i32_307] : memref<4x!tpu.dma_semaphore, #tpu.memory_space<semaphore_mem>> -> memref<1x!tpu.dma_semaphore, #tpu.memory_space<semaphore_mem>>
    %352 = tpu.memref_squeeze %351 : memref<1x!tpu.dma_semaphore, #tpu.memory_space<semaphore_mem>> -> memref<!tpu.dma_semaphore, #tpu.memory_space<semaphore_mem>>
    tpu.wait_dma2 semaphore(%352 : memref<!tpu.dma_semaphore, #tpu.memory_space<semaphore_mem>>) src(%349 : memref<1x128xf32, #tpu.memory_space<any>>) dst(%350 : memref<1x128xf32, #tpu.memory_space<vmem>>)
    %c0 = arith.constant 0 : index
    %c0_312 = arith.constant 0 : index
    %353 = vector.load %arg8[%c0, %c0_312] : memref<8x128xf32, #tpu.memory_space<vmem>>, vector<8x128xf32>
    %c0_313 = arith.constant 0 : index
    %c0_314 = arith.constant 0 : index
    %354 = vector.load %arg9[%c0_313, %c0_314] : memref<8x128xf32, #tpu.memory_space<vmem>>, vector<8x128xf32>
    %355 = arith.addf %353, %354 : vector<8x128xf32>
    %c0_315 = arith.constant 0 : index
    %c0_316 = arith.constant 0 : index
    %356 = vector.load %arg10[%c0_315, %c0_316] : memref<8x128xf32, #tpu.memory_space<vmem>>, vector<8x128xf32>
    %357 = arith.subf %355, %356 : vector<8x128xf32>
    %c0_317 = arith.constant 0 : index
    %c0_318 = arith.constant 0 : index
    %358 = vector.load %arg7[%c0_317, %c0_318] : memref<8x256xf32, #tpu.memory_space<vmem>>, vector<8x128xf32>
    tpu.vector_store %arg7[%c0_317, %c0_318], %357 {strides = array<i32>} : memref<8x256xf32, #tpu.memory_space<vmem>>, vector<8x128xf32>,
    %c0_319 = arith.constant 0 : index
    %c0_320 = arith.constant 0 : index
    %359 = vector.load %arg11[%c0_319, %c0_320] : memref<8x128xf32, #tpu.memory_space<vmem>>, vector<8x128xf32>
    %360 = arith.subf %355, %359 : vector<8x128xf32>
    %c0_321 = arith.constant 0 : index
    %c128 = arith.constant 128 : index
    %361 = vector.load %arg7[%c0_321, %c128] : memref<8x256xf32, #tpu.memory_space<vmem>>, vector<8x128xf32>
    tpu.vector_store %arg7[%c0_321, %c128], %360 {strides = array<i32>} : memref<8x256xf32, #tpu.memory_space<vmem>>, vector<8x128xf32>,
    return
  }
  func.func @transform_2(%arg0: i32, %arg1: memref<8xi32, #tpu.memory_space<smem>>, %arg2: memref<8xi32, #tpu.memory_space<smem>>, %arg3: memref<8xi32, #tpu.memory_space<smem>>, %arg4: memref<8xi32, #tpu.memory_space<smem>>) -> (i32, i32) {
    %c0_i32 = arith.constant 0 : i32
    %c0_i32_0 = arith.constant 0 : i32
    return %arg0, %c0_i32 : i32, i32
  }
}

</mosaic_0001>

<bundles_post_ra>
// kernel: tpu_custom_call.1
= control target key start
LH: loop header
LB: loop body
LE: loop exit
PB: predicated region body
PF: predicated region fallthrough
CT: control target
= control target key end

     0   :  { %s1631_s21 = smov [#allocation8]   ;;  %s2196_s0 = inlined_call_operand.hbm [shape: s32[8], index: 0, kind: input, shape index: {}]   ;;  %s2197_s4 = inlined_call_operand.hbm [shape: f32[64,128], index: 4, kind: input, shape index: {}]   ;;  %s2198_s5 = inlined_call_operand.hbm [shape: f32[16,128], index: 5, kind: input, shape index: {}]   ;;  %s2199_s6 = inlined_call_operand.hbm [shape: f32[8,256], index: 6, kind: output, shape index: {}]   ;;  %s2200_s1 = inlined_call_operand.vmem [shape: s32[8], index: 1, kind: input, shape index: {}]   ;;  %s2201_s2 = inlined_call_operand.vmem [shape: s32[8], index: 2, kind: input, shape index: {}]   ;;  %s2202_s3 = inlined_call_operand.vmem [shape: s32[8], index: 3, kind: input, shape index: {}]  }
   0x1   :  { %12 = dma.hbm_to_smem %s2196_s0, 16, %s1631_s21, [#allocation7] }
   0x2   :  { %s13_s26 = sshll.u32 %s2200_s1, 4  ;;  %s17_s29 = sshll.u32 %s2201_s2, 4  ;;  %s14_s26 = int_to_ptr.vmem [resolvable:$true] %s13_s26  ;;  %s18_s29 = int_to_ptr.vmem [resolvable:$true] %s17_s29 }
   0x3   :  { %s803_s30 = scalar_lea.vmem %s14_s26, 16  ;;  %p808_p1 = scmp.lt.s32.totalorder %s14_s26, %s14_s26 }
   0x4   :  { %p804_p0 = scmp.ne.s32.totalorder %s14_s26, %s803_s30  ;;  %p809_p2 = scmp.lt.s32.totalorder %s803_s30, %s803_s30 }
   0x6   :  { %p810_p3 = por %p809_p2, %p808_p1 }
   0x8   :  { %p811_p4 = pnand %p810_p3, %p804_p0 }
   0xa   :  { %814 = shalt.err (!%p811_p4)  }
   0xb   :  { %s1632_s7 = smov [#allocation9]   ;;  %s21_s9 = sshll.u32 %s2202_s3, 4  ;;  %s22_s9 = int_to_ptr.vmem [resolvable:$true] %s21_s9 }
   0xc   :  { %16 = dma.vmem_to_smem %s14_s26, 16, %s1632_s7, [#allocation7] }
   0xd   :  { %s815_s1 = scalar_lea.vmem %s18_s29, 16  ;;  %p820_p6 = scmp.lt.s32.totalorder %s18_s29, %s18_s29 }
   0xe   :  { %p816_p5 = scmp.ne.s32.totalorder %s18_s29, %s815_s1  ;;  %p821_p7 = scmp.lt.s32.totalorder %s815_s1, %s815_s1 }
  0x10   :  { %p822_p8 = por %p821_p7, %p820_p6 }
  0x12   :  { %p823_p9 = pnand %p822_p8, %p816_p5 }
  0x14   :  { %826 = shalt.err (!%p823_p9)  }
  0x15   :  { %s1633_s2 = smov [#allocation10]   ;;  %s827_s10 = scalar_lea.vmem %s22_s9, 16 }
  0x16   :  { %20 = dma.vmem_to_smem %s18_s29, 16, %s1633_s2, [#allocation7] }
  0x17   :  { %p828_p10 = scmp.ne.s32.totalorder %s22_s9, %s827_s10  ;;  %p832_p11 = scmp.lt.s32.totalorder %s22_s9, %s22_s9 }
  0x18   :  { %p833_p12 = scmp.lt.s32.totalorder %s827_s10, %s827_s10 }
  0x1a   :  { %p834_p13 = por %p833_p12, %p832_p11 }
  0x1c   :  { %p835_p0 = pnand %p834_p13, %p828_p10 }
  0x1e   :  { %838 = shalt.err (!%p835_p0)  }
  0x1f   :  { %s1634_s11 = smov [#allocation11]  }
  0x20   :  { %24 = dma.vmem_to_smem %s22_s9, 16, %s1634_s11, [#allocation7] }
  0x21   :  { %1563 = dma.done.wait [#allocation7], 64 }
  0x22   :  { %1564 = vsyncadd [#allocation7], 4294967232 }
  0x23   :  { %26 = sfence }
  0x24   :  { %27 = vsyncpa [#allocation13], 0  ;;  %s29_s3 = sld [smem:[#allocation8]]  ;;  %s1635_s12 = smov [#allocation2]  }
  0x25   :  { %s39_s13 = sshll.u32 %s1635_s12, 4  ;;  %s1715_s14 = sld [smem:[#allocation9]]  ;;  %s1717_s13 = int_to_ptr.vmem [resolvable:$true] %s39_s13 }
  0x26   :  { %s1636_s15 = smov [#allocation3]   ;;  %s1719_s17 = sld [smem:[#allocation10]] }
  0x27   :  { %s54_s16 = sshll.u32 %s1636_s15, 4  ;;  %s1637_s18 = smov [#allocation4]   ;;  %s1721_s16 = int_to_ptr.vmem [resolvable:$true] %s54_s16 }
  0x28   :  { %s69_s19 = sshll.u32 %s1637_s18, 4  ;;  %s1723_s20 = sld [smem:[#allocation11]]  ;;  %s1725_s19 = int_to_ptr.vmem [resolvable:$true] %s69_s19 }
  0x29   :  { %s1734_s29 = scalar_lea.hbm %s2197_s4, 1024 }
  0x2a   :  { %s694_s21 = sshll.u32 %s29_s3, 4 }
  0x2b   :  { %s31_s24 = scalar_lea.hbm %s2197_s4, %s694_s21  ;;  %s695_s25 = sshll.u32 %s1715_s14, 4 }
  0x2c   :  { %s839_s26 = scalar_lea.hbm %s31_s24, 16  ;;  %p842_p2 = scmp.lt.s32.totalorder %s31_s24, %s2197_s4 }
  0x2d   :  { %p840_p1 = scmp.ne.s32.totalorder %s31_s24, %s839_s26  ;;  %p843_p3 = scmp.lt.s32.totalorder %s1734_s29, %s839_s26 }
  0x2f   :  { %p844_p4 = por %p843_p3, %p842_p2 }
  0x31   :  { %p845_p5 = pnand %p844_p4, %p840_p1 }
  0x33   :  { %848 = shalt.err (!%p845_p5)  }
  0x34   :  { %s849_s0 = scalar_lea.vmem %s1717_s13, 16  ;;  %s1743_s8 = scalar_lea.vmem %s1717_s13, 128 }
  0x35   :  { %p850_p6 = scmp.ne.s32.totalorder %s1717_s13, %s849_s0  ;;  %p854_p7 = scmp.lt.s32.totalorder %s1717_s13, %s1717_s13 }
  0x36   :  { %p855_p8 = scmp.lt.s32.totalorder %s1743_s8, %s849_s0 }
  0x38   :  { %p856_p9 = por %p855_p8, %p854_p7 }
  0x3a   :  { %p857_p10 = pnand %p856_p9, %p850_p6 }
  0x3c   :  { %860 = shalt.err (!%p857_p10)  }
  0x3d   :  { %42 = dma.hbm_to_vmem [thread:$0]  %s31_s24, 16, %s1717_s13, [#allocation6] }
  0x3e   :  { %s45_s2 = scalar_lea.hbm %s2198_s5, %s695_s25  ;;  %s696_s10 = sshll.u32 %s1719_s17, 4 }
  0x3f   :  { %s861_s11 = scalar_lea.hbm %s45_s2, 16  ;;  %s1756_s14 = scalar_lea.hbm %s2198_s5, 256 }
  0x40   :  { %p862_p11 = scmp.ne.s32.totalorder %s45_s2, %s861_s11  ;;  %p864_p12 = scmp.lt.s32.totalorder %s45_s2, %s2198_s5 }
  0x41   :  { %p865_p13 = scmp.lt.s32.totalorder %s1756_s14, %s861_s11 }
  0x43   :  { %p866_p0 = por %p865_p13, %p864_p12 }
  0x45   :  { %p867_p1 = pnand %p866_p0, %p862_p11 }
  0x47   :  { %870 = shalt.err (!%p867_p1)  }
  0x48   :  { %s871_s17 = scalar_lea.vmem %s1721_s16, 16  ;;  %s1765_s21 = scalar_lea.vmem %s1721_s16, 128 }
  0x49   :  { %p872_p2 = scmp.ne.s32.totalorder %s1721_s16, %s871_s17  ;;  %p876_p3 = scmp.lt.s32.totalorder %s1721_s16, %s1721_s16 }
  0x4a   :  { %p877_p4 = scmp.lt.s32.totalorder %s1765_s21, %s871_s17 }
  0x4c   :  { %p878_p5 = por %p877_p4, %p876_p3 }
  0x4e   :  { %p879_p6 = pnand %p878_p5, %p872_p2 }
  0x50   :  { %882 = shalt.err (!%p879_p6)  }
  0x51   :  { %57 = dma.hbm_to_vmem [thread:$0]  %s45_s2, 16, %s1721_s16, [#allocation6 + $0x1] }
  0x52   :  { %s60_s24 = scalar_lea.hbm %s2197_s4, %s696_s10  ;;  %s697_s25 = sshll.u32 %s1723_s20, 4 }
  0x53   :  { %s883_s26 = scalar_lea.hbm %s60_s24, 16  ;;  %p886_p8 = scmp.lt.s32.totalorder %s60_s24, %s2197_s4 }
  0x54   :  { %p884_p7 = scmp.ne.s32.totalorder %s60_s24, %s883_s26  ;;  %p887_p9 = scmp.lt.s32.totalorder %s1734_s29, %s883_s26 }
  0x56   :  { %p888_p10 = por %p887_p9, %p886_p8 }
  0x58   :  { %p889_p11 = pnand %p888_p10, %p884_p7 }
  0x5a   :  { %892 = shalt.err (!%p889_p11)  }
  0x5b   :  { %s893_s30 = scalar_lea.vmem %s1725_s19, 16  ;;  %s1782_s7 = scalar_lea.vmem %s1725_s19, 128 }
  0x5c   :  { %p894_p12 = scmp.ne.s32.totalorder %s1725_s19, %s893_s30  ;;  %p898_p13 = scmp.lt.s32.totalorder %s1725_s19, %s1725_s19 }
  0x5d   :  { %p899_p0 = scmp.lt.s32.totalorder %s1782_s7, %s893_s30 }
  0x5f   :  { %p900_p1 = por %p899_p0, %p898_p13 }
  0x61   :  { %p901_p2 = pnand %p900_p1, %p894_p12 }
  0x63   :  { %904 = shalt.err (!%p901_p2)  }
  0x64   :  { %72 = dma.hbm_to_vmem [thread:$0]  %s60_s24, 16, %s1725_s19, [#allocation6 + $0x2] }
  0x65   :  { %s75_s9 = scalar_lea.hbm %s2197_s4, %s697_s25  ;;  %s1638_s1 = smov [#allocation5]  }
  0x66   :  { %s84_s2 = sshll.u32 %s1638_s1, 4  ;;  %s698_s10 = sld [smem:[#allocation8 + $0x1]]  ;;  %s1791_s2 = int_to_ptr.vmem [resolvable:$true] %s84_s2 }
  0x67   :  { %s905_s11 = scalar_lea.hbm %s75_s9, 16  ;;  %p908_p4 = scmp.lt.s32.totalorder %s75_s9, %s2197_s4 }
  0x68   :  { %p906_p3 = scmp.ne.s32.totalorder %s75_s9, %s905_s11  ;;  %p909_p5 = scmp.lt.s32.totalorder %s1734_s29, %s905_s11 }
  0x6a   :  { %p910_p6 = por %p909_p5, %p908_p4 }
  0x6c   :  { %p911_p7 = pnand %p910_p6, %p906_p3 }
  0x6e   :  { %914 = shalt.err (!%p911_p7)  }
  0x6f   :  { %s915_s15 = scalar_lea.vmem %s1791_s2, 16  ;;  %s1800_s18 = scalar_lea.vmem %s1791_s2, 128 }
  0x70   :  { %p916_p8 = scmp.ne.s32.totalorder %s1791_s2, %s915_s15  ;;  %p920_p9 = scmp.lt.s32.totalorder %s1791_s2, %s1791_s2 }
  0x71   :  { %p921_p10 = scmp.lt.s32.totalorder %s1800_s18, %s915_s15 }
  0x73   :  { %p922_p11 = por %p921_p10, %p920_p9 }
  0x75   :  { %p923_p12 = pnand %p922_p11, %p916_p8 }
  0x77   :  { %926 = shalt.err (!%p923_p12)  }
  0x78   :  { %87 = dma.hbm_to_vmem [thread:$0]  %s75_s9, 16, %s1791_s2, [#allocation6 + $0x3] }
  0x79   :  { %s1639_s17 = smov [#allocation2 + $0x1]   ;;  %s700_s23 = sld [smem:[#allocation9 + $0x1]] }
  0x7a   :  { %s100_s22 = sshll.u32 %s1639_s17, 4  ;;  %s1640_s24 = smov [#allocation3 + $0x1]   ;;  %s101_s22 = int_to_ptr.vmem [resolvable:$true] %s100_s22 }
  0x7b   :  { %s115_s25 = sshll.u32 %s1640_s24, 4  ;;  %s1806_s26 = sld [smem:[#allocation10 + $0x1]]  ;;  %s1808_s25 = int_to_ptr.vmem [resolvable:$true] %s115_s25 }
  0x7c   :  { %s699_s27 = sshll.u32 %s698_s10, 4 }
  0x7d   :  { %s91_s20 = scalar_lea.hbm %s2197_s4, %s699_s27 }
  0x7e   :  { %s927_s0 = scalar_lea.hbm %s91_s20, 16  ;;  %p930_p0 = scmp.lt.s32.totalorder %s91_s20, %s2197_s4 }
  0x7f   :  { %p928_p13 = scmp.ne.s32.totalorder %s91_s20, %s927_s0  ;;  %p931_p1 = scmp.lt.s32.totalorder %s1734_s29, %s927_s0 }
  0x81   :  { %p932_p2 = por %p931_p1, %p930_p0 }
  0x83   :  { %p933_p3 = pnand %p932_p2, %p928_p13 }
  0x85   :  { %936 = shalt.err (!%p933_p3)  }
  0x86   :  { %s937_s9 = scalar_lea.vmem %s101_s22, 16  ;;  %p942_p5 = scmp.lt.s32.totalorder %s101_s22, %s1717_s13 }
  0x87   :  { %p938_p4 = scmp.ne.s32.totalorder %s101_s22, %s937_s9  ;;  %p943_p6 = scmp.lt.s32.totalorder %s1743_s8, %s937_s9 }
  0x89   :  { %p944_p7 = por %p943_p6, %p942_p5 }
  0x8b   :  { %p945_p8 = pnand %p944_p7, %p938_p4 }
  0x8d   :  { %948 = shalt.err (!%p945_p8)  }
  0x8e   :  { %103 = dma.hbm_to_vmem [thread:$0]  %s91_s20, 16, %s101_s22, [#allocation6] }
  0x8f   :  { %s701_s10 = sshll.u32 %s700_s23, 4  ;;  %s1641_s3 = smov [#allocation4 + $0x1]  }
  0x90   :  { %s130_s12 = sshll.u32 %s1641_s3, 4  ;;  %s106_s24 = scalar_lea.hbm %s2198_s5, %s701_s10  ;;  %s1822_s12 = int_to_ptr.vmem [resolvable:$true] %s130_s12 }
  0x91   :  { %s949_s27 = scalar_lea.hbm %s106_s24, 16  ;;  %p952_p10 = scmp.lt.s32.totalorder %s106_s24, %s2198_s5 }
  0x92   :  { %p950_p9 = scmp.ne.s32.totalorder %s106_s24, %s949_s27  ;;  %p953_p11 = scmp.lt.s32.totalorder %s1756_s14, %s949_s27 }
  0x94   :  { %p954_p12 = por %p953_p11, %p952_p10 }
  0x96   :  { %p955_p13 = pnand %p954_p12, %p950_p9 }
  0x98   :  { %958 = shalt.err (!%p955_p13)  }
  0x99   :  { %s959_s22 = scalar_lea.vmem %s1808_s25, 16  ;;  %p964_p1 = scmp.lt.s32.totalorder %s1808_s25, %s1721_s16 }
  0x9a   :  { %p960_p0 = scmp.ne.s32.totalorder %s1808_s25, %s959_s22  ;;  %p965_p2 = scmp.lt.s32.totalorder %s1765_s21, %s959_s22 }
  0x9c   :  { %p966_p3 = por %p965_p2, %p964_p1 }
  0x9e   :  { %p967_p4 = pnand %p966_p3, %p960_p0 }
  0xa0   :  { %970 = shalt.err (!%p967_p4)  }
  0xa1   :  { %118 = dma.hbm_to_vmem [thread:$0]  %s106_s24, 16, %s1808_s25, [#allocation6 + $0x1] }
  0xa2   :  { %s703_s23 = sshll.u32 %s1806_s26, 4  ;;  %s704_s20 = sld [smem:[#allocation11 + $0x1]] }
  0xa3   :  { %s121_s11 = scalar_lea.hbm %s2197_s4, %s703_s23 }
  0xa4   :  { %s971_s9 = scalar_lea.hbm %s121_s11, 16  ;;  %p974_p6 = scmp.lt.s32.totalorder %s121_s11, %s2197_s4 }
  0xa5   :  { %p972_p5 = scmp.ne.s32.totalorder %s121_s11, %s971_s9  ;;  %p975_p7 = scmp.lt.s32.totalorder %s1734_s29, %s971_s9 }
  0xa7   :  { %p976_p8 = por %p975_p7, %p974_p6 }
  0xa9   :  { %p977_p9 = pnand %p976_p8, %p972_p5 }
  0xab   :  { %980 = shalt.err (!%p977_p9)  }
  0xac   :  { %s981_s25 = scalar_lea.vmem %s1822_s12, 16  ;;  %p986_p11 = scmp.lt.s32.totalorder %s1822_s12, %s1725_s19 }
  0xad   :  { %p982_p10 = scmp.ne.s32.totalorder %s1822_s12, %s981_s25  ;;  %p987_p12 = scmp.lt.s32.totalorder %s1782_s7, %s981_s25 }
  0xaf   :  { %p988_p13 = por %p987_p12, %p986_p11 }
  0xb1   :  { %p989_p0 = pnand %p988_p13, %p982_p10 }
  0xb3   :  { %992 = shalt.err (!%p989_p0)  }
  0xb4   :  { %133 = dma.hbm_to_vmem [thread:$0]  %s121_s11, 16, %s1822_s12, [#allocation6 + $0x2] }
  0xb5   :  { %s1642_s26 = smov [#allocation5 + $0x1]   ;;  %s706_s17 = sld [smem:[#allocation8 + $0x2]] }
  0xb6   :  { %s145_s15 = sshll.u32 %s1642_s26, 4  ;;  %s1643_s24 = smov [#allocation2 + $0x2]   ;;  %s146_s15 = int_to_ptr.vmem [resolvable:$true] %s145_s15 }
  0xb7   :  { %s161_s27 = sshll.u32 %s1643_s24, 4  ;;  %s1848_s28 = sld [smem:[#allocation9 + $0x2]]  ;;  %s1850_s27 = int_to_ptr.vmem [resolvable:$true] %s161_s27 }
  0xb8   :  { %s705_s30 = sshll.u32 %s704_s20, 4 }
  0xb9   :  { %s136_s0 = scalar_lea.hbm %s2197_s4, %s705_s30 }
  0xba   :  { %s993_s1 = scalar_lea.hbm %s136_s0, 16  ;;  %p996_p2 = scmp.lt.s32.totalorder %s136_s0, %s2197_s4 }
  0xbb   :  { %p994_p1 = scmp.ne.s32.totalorder %s136_s0, %s993_s1  ;;  %p997_p3 = scmp.lt.s32.totalorder %s1734_s29, %s993_s1 }
  0xbd   :  { %p998_p4 = por %p997_p3, %p996_p2 }
  0xbf   :  { %p999_p5 = pnand %p998_p4, %p994_p1 }
  0xc1   :  { %1002 = shalt.err (!%p999_p5)  }
  0xc2   :  { %s1003_s12 = scalar_lea.vmem %s146_s15, 16  ;;  %p1008_p7 = scmp.lt.s32.totalorder %s146_s15, %s1791_s2 }
  0xc3   :  { %p1004_p6 = scmp.ne.s32.totalorder %s146_s15, %s1003_s12  ;;  %p1009_p8 = scmp.lt.s32.totalorder %s1800_s18, %s1003_s12 }
  0xc5   :  { %p1010_p9 = por %p1009_p8, %p1008_p7 }
  0xc7   :  { %p1011_p10 = pnand %p1010_p9, %p1004_p6 }
  0xc9   :  { %1014 = shalt.err (!%p1011_p10)  }
  0xca   :  { %148 = dma.hbm_to_vmem [thread:$0]  %s136_s0, 16, %s146_s15, [#allocation6 + $0x3] }
  0xcb   :  { %s707_s20 = sshll.u32 %s706_s17, 4  ;;  %s1644_s11 = smov [#allocation3 + $0x2]  }
  0xcc   :  { %s176_s3 = sshll.u32 %s1644_s11, 4  ;;  %s152_s24 = scalar_lea.hbm %s2197_s4, %s707_s20  ;;  %s1864_s3 = int_to_ptr.vmem [resolvable:$true] %s176_s3 }
  0xcd   :  { %s1015_s30 = scalar_lea.hbm %s152_s24, 16  ;;  %p1018_p12 = scmp.lt.s32.totalorder %s152_s24, %s2197_s4 }
  0xce   :  { %p1016_p11 = scmp.ne.s32.totalorder %s152_s24, %s1015_s30  ;;  %p1019_p13 = scmp.lt.s32.totalorder %s1734_s29, %s1015_s30 }
  0xd0   :  { %p1020_p0 = por %p1019_p13, %p1018_p12 }
  0xd2   :  { %p1021_p1 = pnand %p1020_p0, %p1016_p11 }
  0xd4   :  { %1024 = shalt.err (!%p1021_p1)  }
  0xd5   :  { %s1025_s15 = scalar_lea.vmem %s1850_s27, 16  ;;  %p1030_p3 = scmp.lt.s32.totalorder %s1850_s27, %s1717_s13 }
  0xd6   :  { %p1026_p2 = scmp.ne.s32.totalorder %s1850_s27, %s1025_s15  ;;  %p1031_p4 = scmp.lt.s32.totalorder %s1743_s8, %s1025_s15 }
  0xd8   :  { %p1032_p5 = por %p1031_p4, %p1030_p3 }
  0xda   :  { %p1033_p6 = pnand %p1032_p5, %p1026_p2 }
  0xdc   :  { %1036 = shalt.err (!%p1033_p6)  }
  0xdd   :  { %164 = dma.hbm_to_vmem [thread:$0]  %s152_s24, 16, %s1850_s27, [#allocation6] }
  0xde   :  { %s709_s17 = sshll.u32 %s1848_s28, 4  ;;  %s710_s0 = sld [smem:[#allocation10 + $0x2]] }
  0xdf   :  { %s167_s10 = scalar_lea.hbm %s2198_s5, %s709_s17 }
  0xe0   :  { %s1037_s12 = scalar_lea.hbm %s167_s10, 16  ;;  %p1040_p8 = scmp.lt.s32.totalorder %s167_s10, %s2198_s5 }
  0xe1   :  { %p1038_p7 = scmp.ne.s32.totalorder %s167_s10, %s1037_s12  ;;  %p1041_p9 = scmp.lt.s32.totalorder %s1756_s14, %s1037_s12 }
  0xe3   :  { %p1042_p10 = por %p1041_p9, %p1040_p8 }
  0xe5   :  { %p1043_p11 = pnand %p1042_p10, %p1038_p7 }
  0xe7   :  { %1046 = shalt.err (!%p1043_p11)  }
  0xe8   :  { %s1047_s27 = scalar_lea.vmem %s1864_s3, 16  ;;  %p1052_p13 = scmp.lt.s32.totalorder %s1864_s3, %s1721_s16 }
  0xe9   :  { %p1048_p12 = scmp.ne.s32.totalorder %s1864_s3, %s1047_s27  ;;  %p1053_p0 = scmp.lt.s32.totalorder %s1765_s21, %s1047_s27 }
  0xeb   :  { %p1054_p1 = por %p1053_p0, %p1052_p13 }
  0xed   :  { %p1055_p2 = pnand %p1054_p1, %p1048_p12 }
  0xef   :  { %1058 = shalt.err (!%p1055_p2)  }
  0xf0   :  { %179 = dma.hbm_to_vmem [thread:$0]  %s167_s10, 16, %s1864_s3, [#allocation6 + $0x1] }
  0xf1   :  { %s1645_s28 = smov [#allocation4 + $0x2]   ;;  %s712_s26 = sld [smem:[#allocation11 + $0x2]] }
  0xf2   :  { %s191_s25 = sshll.u32 %s1645_s28, 4  ;;  %s1646_s24 = smov [#allocation5 + $0x2]   ;;  %s192_s25 = int_to_ptr.vmem [resolvable:$true] %s191_s25 }
  0xf3   :  { %s206_s30 = sshll.u32 %s1646_s24, 4  ;;  %s1890_s22 = sld [smem:[#allocation8 + $0x3]]  ;;  %s1892_s30 = int_to_ptr.vmem [resolvable:$true] %s206_s30 }
  0xf4   :  { %s711_s23 = sshll.u32 %s710_s0, 4 }
  0xf5   :  { %s182_s1 = scalar_lea.hbm %s2197_s4, %s711_s23 }
  0xf6   :  { %s1059_s9 = scalar_lea.hbm %s182_s1, 16  ;;  %p1062_p4 = scmp.lt.s32.totalorder %s182_s1, %s2197_s4 }
  0xf7   :  { %p1060_p3 = scmp.ne.s32.totalorder %s182_s1, %s1059_s9  ;;  %p1063_p5 = scmp.lt.s32.totalorder %s1734_s29, %s1059_s9 }
  0xf9   :  { %p1064_p6 = por %p1063_p5, %p1062_p4 }
  0xfb   :  { %p1065_p7 = pnand %p1064_p6, %p1060_p3 }
  0xfd   :  { %1068 = shalt.err (!%p1065_p7)  }
  0xfe   :  { %s1069_s3 = scalar_lea.vmem %s192_s25, 16  ;;  %p1074_p9 = scmp.lt.s32.totalorder %s192_s25, %s1725_s19 }
  0xff   :  { %p1070_p8 = scmp.ne.s32.totalorder %s192_s25, %s1069_s3  ;;  %p1075_p10 = scmp.lt.s32.totalorder %s1782_s7, %s1069_s3 }
 0x101   :  { %p1076_p11 = por %p1075_p10, %p1074_p9 }
 0x103   :  { %p1077_p12 = pnand %p1076_p11, %p1070_p8 }
 0x105   :  { %1080 = shalt.err (!%p1077_p12)  }
 0x106   :  { %194 = dma.hbm_to_vmem [thread:$0]  %s182_s1, 16, %s192_s25, [#allocation6 + $0x2] }
 0x107   :  { %s713_s0 = sshll.u32 %s712_s26, 4  ;;  %s1647_s10 = smov [#allocation2 + $0x3]  }
 0x108   :  { %s222_s11 = sshll.u32 %s1647_s10, 4  ;;  %s197_s24 = scalar_lea.hbm %s2197_s4, %s713_s0  ;;  %s1906_s11 = int_to_ptr.vmem [resolvable:$true] %s222_s11 }
 0x109   :  { %s1081_s23 = scalar_lea.hbm %s197_s24, 16  ;;  %p1084_p0 = scmp.lt.s32.totalorder %s197_s24, %s2197_s4 }
 0x10a   :  { %p1082_p13 = scmp.ne.s32.totalorder %s197_s24, %s1081_s23  ;;  %p1085_p1 = scmp.lt.s32.totalorder %s1734_s29, %s1081_s23 }
 0x10c   :  { %p1086_p2 = por %p1085_p1, %p1084_p0 }
 0x10e   :  { %p1087_p3 = pnand %p1086_p2, %p1082_p13 }
 0x110   :  { %1090 = shalt.err (!%p1087_p3)  }
 0x111   :  { %s1091_s25 = scalar_lea.vmem %s1892_s30, 16  ;;  %p1096_p5 = scmp.lt.s32.totalorder %s1892_s30, %s1791_s2 }
 0x112   :  { %p1092_p4 = scmp.ne.s32.totalorder %s1892_s30, %s1091_s25  ;;  %p1097_p6 = scmp.lt.s32.totalorder %s1800_s18, %s1091_s25 }
 0x114   :  { %p1098_p7 = por %p1097_p6, %p1096_p5 }
 0x116   :  { %p1099_p8 = pnand %p1098_p7, %p1092_p4 }
 0x118   :  { %1102 = shalt.err (!%p1099_p8)  }
 0x119   :  { %209 = dma.hbm_to_vmem [thread:$0]  %s197_s24, 16, %s1892_s30, [#allocation6 + $0x3] }
 0x11a   :  { %s715_s26 = sshll.u32 %s1890_s22, 4  ;;  %s716_s1 = sld [smem:[#allocation9 + $0x3]] }
 0x11b   :  { %s213_s20 = scalar_lea.hbm %s2197_s4, %s715_s26 }
 0x11c   :  { %s1103_s3 = scalar_lea.hbm %s213_s20, 16  ;;  %p1106_p10 = scmp.lt.s32.totalorder %s213_s20, %s2197_s4 }
 0x11d   :  { %p1104_p9 = scmp.ne.s32.totalorder %s213_s20, %s1103_s3  ;;  %p1107_p11 = scmp.lt.s32.totalorder %s1734_s29, %s1103_s3 }
 0x11f   :  { %p1108_p12 = por %p1107_p11, %p1106_p10 }
 0x121   :  { %p1109_p13 = pnand %p1108_p12, %p1104_p9 }
 0x123   :  { %1112 = shalt.err (!%p1109_p13)  }
 0x124   :  { %s1113_s30 = scalar_lea.vmem %s1906_s11, 16  ;;  %p1118_p1 = scmp.lt.s32.totalorder %s1906_s11, %s1717_s13 }
 0x125   :  { %p1114_p0 = scmp.ne.s32.totalorder %s1906_s11, %s1113_s30  ;;  %p1119_p2 = scmp.lt.s32.totalorder %s1743_s8, %s1113_s30 }
 0x127   :  { %p1120_p3 = por %p1119_p2, %p1118_p1 }
 0x129   :  { %p1121_p4 = pnand %p1120_p3, %p1114_p0 }
 0x12b   :  { %1124 = shalt.err (!%p1121_p4)  }
 0x12c   :  { %225 = dma.hbm_to_vmem [thread:$0]  %s213_s20, 16, %s1906_s11, [#allocation6] }
 0x12d   :  { %s1648_s22 = smov [#allocation3 + $0x3]   ;;  %s718_s28 = sld [smem:[#allocation10 + $0x3]] }
 0x12e   :  { %s237_s27 = sshll.u32 %s1648_s22, 4  ;;  %s1649_s24 = smov [#allocation4 + $0x3]   ;;  %s238_s27 = int_to_ptr.vmem [resolvable:$true] %s237_s27 }
 0x12f   :  { %s252_s23 = sshll.u32 %s1649_s24, 4  ;;  %s1932_s15 = sld [smem:[#allocation11 + $0x3]]  ;;  %s1934_s23 = int_to_ptr.vmem [resolvable:$true] %s252_s23 }
 0x130   :  { %s717_s17 = sshll.u32 %s716_s1, 4 }
 0x131   :  { %s228_s9 = scalar_lea.hbm %s2198_s5, %s717_s17 }
 0x132   :  { %s1125_s12 = scalar_lea.hbm %s228_s9, 16  ;;  %p1128_p6 = scmp.lt.s32.totalorder %s228_s9, %s2198_s5 }
 0x133   :  { %p1126_p5 = scmp.ne.s32.totalorder %s228_s9, %s1125_s12  ;;  %p1129_p7 = scmp.lt.s32.totalorder %s1756_s14, %s1125_s12 }
 0x135   :  { %p1130_p8 = por %p1129_p7, %p1128_p6 }
 0x137   :  { %p1131_p9 = pnand %p1130_p8, %p1126_p5 }
 0x139   :  { %1134 = shalt.err (!%p1131_p9)  }
 0x13a   :  { %s1135_s11 = scalar_lea.vmem %s238_s27, 16  ;;  %p1140_p11 = scmp.lt.s32.totalorder %s238_s27, %s1721_s16 }
 0x13b   :  { %p1136_p10 = scmp.ne.s32.totalorder %s238_s27, %s1135_s11  ;;  %p1141_p12 = scmp.lt.s32.totalorder %s1765_s21, %s1135_s11 }
 0x13d   :  { %p1142_p13 = por %p1141_p12, %p1140_p11 }
 0x13f   :  { %p1143_p0 = pnand %p1142_p13, %p1136_p10 }
 0x141   :  { %1146 = shalt.err (!%p1143_p0)  }
 0x142   :  { %240 = dma.hbm_to_vmem [thread:$0]  %s228_s9, 16, %s238_s27, [#allocation6 + $0x1] }
 0x143   :  { %s719_s1 = sshll.u32 %s718_s28, 4  ;;  %s1650_s20 = smov [#allocation5 + $0x3]  }
 0x144   :  { %s267_s10 = sshll.u32 %s1650_s20, 4  ;;  %s243_s24 = scalar_lea.hbm %s2197_s4, %s719_s1  ;;  %s1948_s10 = int_to_ptr.vmem [resolvable:$true] %s267_s10 }
 0x145   :  { %s1147_s17 = scalar_lea.hbm %s243_s24, 16  ;;  %p1150_p2 = scmp.lt.s32.totalorder %s243_s24, %s2197_s4 }
 0x146   :  { %p1148_p1 = scmp.ne.s32.totalorder %s243_s24, %s1147_s17  ;;  %p1151_p3 = scmp.lt.s32.totalorder %s1734_s29, %s1147_s17 }
 0x148   :  { %p1152_p4 = por %p1151_p3, %p1150_p2 }
 0x14a   :  { %p1153_p5 = pnand %p1152_p4, %p1148_p1 }
 0x14c   :  { %1156 = shalt.err (!%p1153_p5)  }
 0x14d   :  { %s1157_s27 = scalar_lea.vmem %s1934_s23, 16  ;;  %p1162_p7 = scmp.lt.s32.totalorder %s1934_s23, %s1725_s19 }
 0x14e   :  { %p1158_p6 = scmp.ne.s32.totalorder %s1934_s23, %s1157_s27  ;;  %p1163_p8 = scmp.lt.s32.totalorder %s1782_s7, %s1157_s27 }
 0x150   :  { %p1164_p9 = por %p1163_p8, %p1162_p7 }
 0x152   :  { %p1165_p10 = pnand %p1164_p9, %p1158_p6 }
 0x154   :  { %1168 = shalt.err (!%p1165_p10)  }
 0x155   :  { %255 = dma.hbm_to_vmem [thread:$0]  %s243_s24, 16, %s1934_s23, [#allocation6 + $0x2] }
 0x156   :  { %s721_s28 = sshll.u32 %s1932_s15, 4  ;;  %s722_s9 = sld [smem:[#allocation8 + $0x4]] }
 0x157   :  { %s258_s0 = scalar_lea.hbm %s2197_s4, %s721_s28 }
 0x158   :  { %s1169_s11 = scalar_lea.hbm %s258_s0, 16  ;;  %p1172_p12 = scmp.lt.s32.totalorder %s258_s0, %s2197_s4 }
 0x159   :  { %p1170_p11 = scmp.ne.s32.totalorder %s258_s0, %s1169_s11  ;;  %p1173_p13 = scmp.lt.s32.totalorder %s1734_s29, %s1169_s11 }
 0x15b   :  { %p1174_p0 = por %p1173_p13, %p1172_p12 }
 0x15d   :  { %p1175_p1 = pnand %p1174_p0, %p1170_p11 }
 0x15f   :  { %1178 = shalt.err (!%p1175_p1)  }
 0x160   :  { %s1179_s23 = scalar_lea.vmem %s1948_s10, 16  ;;  %p1184_p3 = scmp.lt.s32.totalorder %s1948_s10, %s1791_s2 }
 0x161   :  { %p1180_p2 = scmp.ne.s32.totalorder %s1948_s10, %s1179_s23  ;;  %p1185_p4 = scmp.lt.s32.totalorder %s1800_s18, %s1179_s23 }
 0x163   :  { %p1186_p5 = por %p1185_p4, %p1184_p3 }
 0x165   :  { %p1187_p6 = pnand %p1186_p5, %p1180_p2 }
 0x167   :  { %1190 = shalt.err (!%p1187_p6)  }
 0x168   :  { %270 = dma.hbm_to_vmem [thread:$0]  %s258_s0, 16, %s1948_s10, [#allocation6 + $0x3] }
 0x169   :  { %s1651_s15 = smov [#allocation2 + $0x4]   ;;  %s724_s22 = sld [smem:[#allocation9 + $0x4]] }
 0x16a   :  { %s283_s30 = sshll.u32 %s1651_s15, 4  ;;  %s1652_s24 = smov [#allocation3 + $0x4]   ;;  %s284_s30 = int_to_ptr.vmem [resolvable:$true] %s283_s30 }
 0x16b   :  { %s298_s17 = sshll.u32 %s1652_s24, 4  ;;  %s1974_s25 = sld [smem:[#allocation10 + $0x4]]  ;;  %s1976_s17 = int_to_ptr.vmem [resolvable:$true] %s298_s17 }
 0x16c   :  { %s723_s26 = sshll.u32 %s722_s9, 4 }
 0x16d   :  { %s274_s12 = scalar_lea.hbm %s2197_s4, %s723_s26 }
 0x16e   :  { %s1191_s3 = scalar_lea.hbm %s274_s12, 16  ;;  %p1194_p8 = scmp.lt.s32.totalorder %s274_s12, %s2197_s4 }
 0x16f   :  { %p1192_p7 = scmp.ne.s32.totalorder %s274_s12, %s1191_s3  ;;  %p1195_p9 = scmp.lt.s32.totalorder %s1734_s29, %s1191_s3 }
 0x171   :  { %p1196_p10 = por %p1195_p9, %p1194_p8 }
 0x173   :  { %p1197_p11 = pnand %p1196_p10, %p1192_p7 }
 0x175   :  { %1200 = shalt.err (!%p1197_p11)  }
 0x176   :  { %s1201_s10 = scalar_lea.vmem %s284_s30, 16  ;;  %p1206_p13 = scmp.lt.s32.totalorder %s284_s30, %s1717_s13 }
 0x177   :  { %p1202_p12 = scmp.ne.s32.totalorder %s284_s30, %s1201_s10  ;;  %p1207_p0 = scmp.lt.s32.totalorder %s1743_s8, %s1201_s10 }
 0x179   :  { %p1208_p1 = por %p1207_p0, %p1206_p13 }
 0x17b   :  { %p1209_p2 = pnand %p1208_p1, %p1202_p12 }
 0x17d   :  { %1212 = shalt.err (!%p1209_p2)  }
 0x17e   :  { %286 = dma.hbm_to_vmem [thread:$0]  %s274_s12, 16, %s284_s30, [#allocation6] }
 0x17f   :  { %s725_s9 = sshll.u32 %s724_s22, 4  ;;  %s1653_s0 = smov [#allocation4 + $0x4]  }
 0x180   :  { %s313_s20 = sshll.u32 %s1653_s0, 4  ;;  %s289_s24 = scalar_lea.hbm %s2198_s5, %s725_s9  ;;  %s1990_s20 = int_to_ptr.vmem [resolvable:$true] %s313_s20 }
 0x181   :  { %s1213_s26 = scalar_lea.hbm %s289_s24, 16  ;;  %p1216_p4 = scmp.lt.s32.totalorder %s289_s24, %s2198_s5 }
 0x182   :  { %p1214_p3 = scmp.ne.s32.totalorder %s289_s24, %s1213_s26  ;;  %p1217_p5 = scmp.lt.s32.totalorder %s1756_s14, %s1213_s26 }
 0x184   :  { %p1218_p6 = por %p1217_p5, %p1216_p4 }
 0x186   :  { %p1219_p7 = pnand %p1218_p6, %p1214_p3 }
 0x188   :  { %1222 = shalt.err (!%p1219_p7)  }
 0x189   :  { %s1223_s30 = scalar_lea.vmem %s1976_s17, 16  ;;  %p1228_p9 = scmp.lt.s32.totalorder %s1976_s17, %s1721_s16 }
 0x18a   :  { %p1224_p8 = scmp.ne.s32.totalorder %s1976_s17, %s1223_s30  ;;  %p1229_p10 = scmp.lt.s32.totalorder %s1765_s21, %s1223_s30 }
 0x18c   :  { %p1230_p11 = por %p1229_p10, %p1228_p9 }
 0x18e   :  { %p1231_p12 = pnand %p1230_p11, %p1224_p8 }
 0x190   :  { %1234 = shalt.err (!%p1231_p12)  }
 0x191   :  { %301 = dma.hbm_to_vmem [thread:$0]  %s289_s24, 16, %s1976_s17, [#allocation6 + $0x1] }
 0x192   :  { %s727_s22 = sshll.u32 %s1974_s25, 4  ;;  %s728_s12 = sld [smem:[#allocation11 + $0x4]] }
 0x193   :  { %s304_s1 = scalar_lea.hbm %s2197_s4, %s727_s22 }
 0x194   :  { %s1235_s10 = scalar_lea.hbm %s304_s1, 16  ;;  %p1238_p0 = scmp.lt.s32.totalorder %s304_s1, %s2197_s4 }
 0x195   :  { %p1236_p13 = scmp.ne.s32.totalorder %s304_s1, %s1235_s10  ;;  %p1239_p1 = scmp.lt.s32.totalorder %s1734_s29, %s1235_s10 }
 0x197   :  { %p1240_p2 = por %p1239_p1, %p1238_p0 }
 0x199   :  { %p1241_p3 = pnand %p1240_p2, %p1236_p13 }
 0x19b   :  { %1244 = shalt.err (!%p1241_p3)  }
 0x19c   :  { %s1245_s17 = scalar_lea.vmem %s1990_s20, 16  ;;  %p1250_p5 = scmp.lt.s32.totalorder %s1990_s20, %s1725_s19 }
 0x19d   :  { %p1246_p4 = scmp.ne.s32.totalorder %s1990_s20, %s1245_s17  ;;  %p1251_p6 = scmp.lt.s32.totalorder %s1782_s7, %s1245_s17 }
 0x19f   :  { %p1252_p7 = por %p1251_p6, %p1250_p5 }
 0x1a1   :  { %p1253_p8 = pnand %p1252_p7, %p1246_p4 }
 0x1a3   :  { %1256 = shalt.err (!%p1253_p8)  }
 0x1a4   :  { %316 = dma.hbm_to_vmem [thread:$0]  %s304_s1, 16, %s1990_s20, [#allocation6 + $0x2] }
 0x1a5   :  { %s1654_s25 = smov [#allocation5 + $0x4]   ;;  %s730_s15 = sld [smem:[#allocation8 + $0x5]] }
 0x1a6   :  { %s328_s23 = sshll.u32 %s1654_s25, 4  ;;  %s1655_s24 = smov [#allocation2 + $0x5]   ;;  %s329_s23 = int_to_ptr.vmem [resolvable:$true] %s328_s23 }
 0x1a7   :  { %s344_s26 = sshll.u32 %s1655_s24, 4  ;;  %s2016_s27 = sld [smem:[#allocation9 + $0x5]]  ;;  %s2018_s26 = int_to_ptr.vmem [resolvable:$true] %s344_s26 }
 0x1a8   :  { %s729_s28 = sshll.u32 %s728_s12, 4 }
 0x1a9   :  { %s319_s3 = scalar_lea.hbm %s2197_s4, %s729_s28 }
 0x1aa   :  { %s1257_s11 = scalar_lea.hbm %s319_s3, 16  ;;  %p1260_p10 = scmp.lt.s32.totalorder %s319_s3, %s2197_s4 }
 0x1ab   :  { %p1258_p9 = scmp.ne.s32.totalorder %s319_s3, %s1257_s11  ;;  %p1261_p11 = scmp.lt.s32.totalorder %s1734_s29, %s1257_s11 }
 0x1ad   :  { %p1262_p12 = por %p1261_p11, %p1260_p10 }
 0x1af   :  { %p1263_p13 = pnand %p1262_p12, %p1258_p9 }
 0x1b1   :  { %1266 = shalt.err (!%p1263_p13)  }
 0x1b2   :  { %s1267_s20 = scalar_lea.vmem %s329_s23, 16  ;;  %p1272_p1 = scmp.lt.s32.totalorder %s329_s23, %s1791_s2 }
 0x1b3   :  { %p1268_p0 = scmp.ne.s32.totalorder %s329_s23, %s1267_s20  ;;  %p1273_p2 = scmp.lt.s32.totalorder %s1800_s18, %s1267_s20 }
 0x1b5   :  { %p1274_p3 = por %p1273_p2, %p1272_p1 }
 0x1b7   :  { %p1275_p4 = pnand %p1274_p3, %p1268_p0 }
 0x1b9   :  { %1278 = shalt.err (!%p1275_p4)  }
 0x1ba   :  { %331 = dma.hbm_to_vmem [thread:$0]  %s319_s3, 16, %s329_s23, [#allocation6 + $0x3] }
 0x1bb   :  { %s731_s12 = sshll.u32 %s730_s15, 4  ;;  %s1656_s1 = smov [#allocation3 + $0x5]  }
 0x1bc   :  { %s359_s0 = sshll.u32 %s1656_s1, 4  ;;  %s335_s24 = scalar_lea.hbm %s2197_s4, %s731_s12  ;;  %s2032_s0 = int_to_ptr.vmem [resolvable:$true] %s359_s0 }
 0x1bd   :  { %s1279_s28 = scalar_lea.hbm %s335_s24, 16  ;;  %p1282_p6 = scmp.lt.s32.totalorder %s335_s24, %s2197_s4 }
 0x1be   :  { %p1280_p5 = scmp.ne.s32.totalorder %s335_s24, %s1279_s28  ;;  %p1283_p7 = scmp.lt.s32.totalorder %s1734_s29, %s1279_s28 }
 0x1c0   :  { %p1284_p8 = por %p1283_p7, %p1282_p6 }
 0x1c2   :  { %p1285_p9 = pnand %p1284_p8, %p1280_p5 }
 0x1c4   :  { %1288 = shalt.err (!%p1285_p9)  }
 0x1c5   :  { %s1289_s23 = scalar_lea.vmem %s2018_s26, 16  ;;  %p1294_p11 = scmp.lt.s32.totalorder %s2018_s26, %s1717_s13 }
 0x1c6   :  { %p1290_p10 = scmp.ne.s32.totalorder %s2018_s26, %s1289_s23  ;;  %p1295_p12 = scmp.lt.s32.totalorder %s1743_s8, %s1289_s23 }
 0x1c8   :  { %p1296_p13 = por %p1295_p12, %p1294_p11 }
 0x1ca   :  { %p1297_p0 = pnand %p1296_p13, %p1290_p10 }
 0x1cc   :  { %1300 = shalt.err (!%p1297_p0)  }
 0x1cd   :  { %347 = dma.hbm_to_vmem [thread:$0]  %s335_s24, 16, %s2018_s26, [#allocation6] }
 0x1ce   :  { %s733_s15 = sshll.u32 %s2016_s27, 4  ;;  %s734_s3 = sld [smem:[#allocation10 + $0x5]] }
 0x1cf   :  { %s350_s9 = scalar_lea.hbm %s2198_s5, %s733_s15 }
 0x1d0   :  { %s1301_s20 = scalar_lea.hbm %s350_s9, 16  ;;  %p1304_p2 = scmp.lt.s32.totalorder %s350_s9, %s2198_s5 }
 0x1d1   :  { %p1302_p1 = scmp.ne.s32.totalorder %s350_s9, %s1301_s20  ;;  %p1305_p3 = scmp.lt.s32.totalorder %s1756_s14, %s1301_s20 }
 0x1d3   :  { %p1306_p4 = por %p1305_p3, %p1304_p2 }
 0x1d5   :  { %p1307_p5 = pnand %p1306_p4, %p1302_p1 }
 0x1d7   :  { %1310 = shalt.err (!%p1307_p5)  }
 0x1d8   :  { %s1311_s26 = scalar_lea.vmem %s2032_s0, 16  ;;  %p1316_p7 = scmp.lt.s32.totalorder %s2032_s0, %s1721_s16 }
 0x1d9   :  { %p1312_p6 = scmp.ne.s32.totalorder %s2032_s0, %s1311_s26  ;;  %p1317_p8 = scmp.lt.s32.totalorder %s1765_s21, %s1311_s26 }
 0x1db   :  { %p1318_p9 = por %p1317_p8, %p1316_p7 }
 0x1dd   :  { %p1319_p10 = pnand %p1318_p9, %p1312_p6 }
 0x1df   :  { %1322 = shalt.err (!%p1319_p10)  }
 0x1e0   :  { %362 = dma.hbm_to_vmem [thread:$0]  %s350_s9, 16, %s2032_s0, [#allocation6 + $0x1] }
 0x1e1   :  { %s1657_s27 = smov [#allocation4 + $0x5]   ;;  %s736_s25 = sld [smem:[#allocation11 + $0x5]] }
 0x1e2   :  { %s374_s17 = sshll.u32 %s1657_s27, 4  ;;  %s1658_s24 = smov [#allocation5 + $0x5]   ;;  %s375_s17 = int_to_ptr.vmem [resolvable:$true] %s374_s17 }
 0x1e3   :  { %s389_s28 = sshll.u32 %s1658_s24, 4  ;;  %s2058_s30 = sld [smem:[#allocation8 + $0x6]]  ;;  %s2060_s28 = int_to_ptr.vmem [resolvable:$true] %s389_s28 }
 0x1e4   :  { %s735_s22 = sshll.u32 %s734_s3, 4 }
 0x1e5   :  { %s365_s11 = scalar_lea.hbm %s2197_s4, %s735_s22 }
 0x1e6   :  { %s1323_s10 = scalar_lea.hbm %s365_s11, 16  ;;  %p1326_p12 = scmp.lt.s32.totalorder %s365_s11, %s2197_s4 }
 0x1e7   :  { %p1324_p11 = scmp.ne.s32.totalorder %s365_s11, %s1323_s10  ;;  %p1327_p13 = scmp.lt.s32.totalorder %s1734_s29, %s1323_s10 }
 0x1e9   :  { %p1328_p0 = por %p1327_p13, %p1326_p12 }
 0x1eb   :  { %p1329_p1 = pnand %p1328_p0, %p1324_p11 }
 0x1ed   :  { %1332 = shalt.err (!%p1329_p1)  }
 0x1ee   :  { %s1333_s0 = scalar_lea.vmem %s375_s17, 16  ;;  %p1338_p3 = scmp.lt.s32.totalorder %s375_s17, %s1725_s19 }
 0x1ef   :  { %p1334_p2 = scmp.ne.s32.totalorder %s375_s17, %s1333_s0  ;;  %p1339_p4 = scmp.lt.s32.totalorder %s1782_s7, %s1333_s0 }
 0x1f1   :  { %p1340_p5 = por %p1339_p4, %p1338_p3 }
 0x1f3   :  { %p1341_p6 = pnand %p1340_p5, %p1334_p2 }
 0x1f5   :  { %1344 = shalt.err (!%p1341_p6)  }
 0x1f6   :  { %377 = dma.hbm_to_vmem [thread:$0]  %s365_s11, 16, %s375_s17, [#allocation6 + $0x2] }
 0x1f7   :  { %s737_s3 = sshll.u32 %s736_s25, 4  ;;  %s1659_s9 = smov [#allocation2 + $0x6]  }
 0x1f8   :  { %s405_s1 = sshll.u32 %s1659_s9, 4  ;;  %s380_s24 = scalar_lea.hbm %s2197_s4, %s737_s3  ;;  %s2074_s1 = int_to_ptr.vmem [resolvable:$true] %s405_s1 }
 0x1f9   :  { %s1345_s22 = scalar_lea.hbm %s380_s24, 16  ;;  %p1348_p8 = scmp.lt.s32.totalorder %s380_s24, %s2197_s4 }
 0x1fa   :  { %p1346_p7 = scmp.ne.s32.totalorder %s380_s24, %s1345_s22  ;;  %p1349_p9 = scmp.lt.s32.totalorder %s1734_s29, %s1345_s22 }
 0x1fc   :  { %p1350_p10 = por %p1349_p9, %p1348_p8 }
 0x1fe   :  { %p1351_p11 = pnand %p1350_p10, %p1346_p7 }
 0x200   :  { %1354 = shalt.err (!%p1351_p11)  }
 0x201   :  { %s1355_s17 = scalar_lea.vmem %s2060_s28, 16  ;;  %p1360_p13 = scmp.lt.s32.totalorder %s2060_s28, %s1791_s2 }
 0x202   :  { %p1356_p12 = scmp.ne.s32.totalorder %s2060_s28, %s1355_s17  ;;  %p1361_p0 = scmp.lt.s32.totalorder %s1800_s18, %s1355_s17 }
 0x204   :  { %p1362_p1 = por %p1361_p0, %p1360_p13 }
 0x206   :  { %p1363_p2 = pnand %p1362_p1, %p1356_p12 }
 0x208   :  { %1366 = shalt.err (!%p1363_p2)  }
 0x209   :  { %392 = dma.hbm_to_vmem [thread:$0]  %s380_s24, 16, %s2060_s28, [#allocation6 + $0x3] }
 0x20a   :  { %s739_s25 = sshll.u32 %s2058_s30, 4  ;;  %s740_s11 = sld [smem:[#allocation9 + $0x6]] }
 0x20b   :  { %s396_s12 = scalar_lea.hbm %s2197_s4, %s739_s25 }
 0x20c   :  { %s1367_s0 = scalar_lea.hbm %s396_s12, 16  ;;  %p1370_p4 = scmp.lt.s32.totalorder %s396_s12, %s2197_s4 }
 0x20d   :  { %p1368_p3 = scmp.ne.s32.totalorder %s396_s12, %s1367_s0  ;;  %p1371_p5 = scmp.lt.s32.totalorder %s1734_s29, %s1367_s0 }
 0x20f   :  { %p1372_p6 = por %p1371_p5, %p1370_p4 }
 0x211   :  { %p1373_p7 = pnand %p1372_p6, %p1368_p3 }
 0x213   :  { %1376 = shalt.err (!%p1373_p7)  }
 0x214   :  { %s1377_s28 = scalar_lea.vmem %s2074_s1, 16  ;;  %p1382_p9 = scmp.lt.s32.totalorder %s2074_s1, %s1717_s13 }
 0x215   :  { %p1378_p8 = scmp.ne.s32.totalorder %s2074_s1, %s1377_s28  ;;  %p1383_p10 = scmp.lt.s32.totalorder %s1743_s8, %s1377_s28 }
 0x217   :  { %p1384_p11 = por %p1383_p10, %p1382_p9 }
 0x219   :  { %p1385_p12 = pnand %p1384_p11, %p1378_p8 }
 0x21b   :  { %1388 = shalt.err (!%p1385_p12)  }
 0x21c   :  { %408 = dma.hbm_to_vmem [thread:$0]  %s396_s12, 16, %s2074_s1, [#allocation6] }
 0x21d   :  { %s1660_s30 = smov [#allocation3 + $0x6]   ;;  %s742_s27 = sld [smem:[#allocation10 + $0x6]] }
 0x21e   :  { %s420_s26 = sshll.u32 %s1660_s30, 4  ;;  %s1661_s24 = smov [#allocation4 + $0x6]   ;;  %s421_s26 = int_to_ptr.vmem [resolvable:$true] %s420_s26 }
 0x21f   :  { %s435_s22 = sshll.u32 %s1661_s24, 4  ;;  %s2100_s23 = sld [smem:[#allocation11 + $0x6]]  ;;  %s2102_s22 = int_to_ptr.vmem [resolvable:$true] %s435_s22 }
 0x220   :  { %s741_s15 = sshll.u32 %s740_s11, 4 }
 0x221   :  { %s411_s10 = scalar_lea.hbm %s2198_s5, %s741_s15 }
 0x222   :  { %s1389_s20 = scalar_lea.hbm %s411_s10, 16  ;;  %p1392_p0 = scmp.lt.s32.totalorder %s411_s10, %s2198_s5 }
 0x223   :  { %p1390_p13 = scmp.ne.s32.totalorder %s411_s10, %s1389_s20  ;;  %p1393_p1 = scmp.lt.s32.totalorder %s1756_s14, %s1389_s20 }
 0x225   :  { %p1394_p2 = por %p1393_p1, %p1392_p0 }
 0x227   :  { %p1395_p3 = pnand %p1394_p2, %p1390_p13 }
 0x229   :  { %1398 = shalt.err (!%p1395_p3)  }
 0x22a   :  { %s1399_s1 = scalar_lea.vmem %s421_s26, 16  ;;  %p1404_p5 = scmp.lt.s32.totalorder %s421_s26, %s1721_s16 }
 0x22b   :  { %p1400_p4 = scmp.ne.s32.totalorder %s421_s26, %s1399_s1  ;;  %p1405_p6 = scmp.lt.s32.totalorder %s1765_s21, %s1399_s1 }
 0x22d   :  { %p1406_p7 = por %p1405_p6, %p1404_p5 }
 0x22f   :  { %p1407_p8 = pnand %p1406_p7, %p1400_p4 }
 0x231   :  { %1410 = shalt.err (!%p1407_p8)  }
 0x232   :  { %423 = dma.hbm_to_vmem [thread:$0]  %s411_s10, 16, %s421_s26, [#allocation6 + $0x1] }
 0x233   :  { %s743_s11 = sshll.u32 %s742_s27, 4  ;;  %s1662_s12 = smov [#allocation5 + $0x6]  }
 0x234   :  { %s450_s9 = sshll.u32 %s1662_s12, 4  ;;  %s426_s24 = scalar_lea.hbm %s2197_s4, %s743_s11  ;;  %s2116_s9 = int_to_ptr.vmem [resolvable:$true] %s450_s9 }
 0x235   :  { %s1411_s15 = scalar_lea.hbm %s426_s24, 16  ;;  %p1414_p10 = scmp.lt.s32.totalorder %s426_s24, %s2197_s4 }
 0x236   :  { %p1412_p9 = scmp.ne.s32.totalorder %s426_s24, %s1411_s15  ;;  %p1415_p11 = scmp.lt.s32.totalorder %s1734_s29, %s1411_s15 }
 0x238   :  { %p1416_p12 = por %p1415_p11, %p1414_p10 }
 0x23a   :  { %p1417_p13 = pnand %p1416_p12, %p1412_p9 }
 0x23c   :  { %1420 = shalt.err (!%p1417_p13)  }
 0x23d   :  { %s1421_s26 = scalar_lea.vmem %s2102_s22, 16  ;;  %p1426_p1 = scmp.lt.s32.totalorder %s2102_s22, %s1725_s19 }
 0x23e   :  { %p1422_p0 = scmp.ne.s32.totalorder %s2102_s22, %s1421_s26  ;;  %p1427_p2 = scmp.lt.s32.totalorder %s1782_s7, %s1421_s26 }
 0x240   :  { %p1428_p3 = por %p1427_p2, %p1426_p1 }
 0x242   :  { %p1429_p4 = pnand %p1428_p3, %p1422_p0 }
 0x244   :  { %1432 = shalt.err (!%p1429_p4)  }
 0x245   :  { %438 = dma.hbm_to_vmem [thread:$0]  %s426_s24, 16, %s2102_s22, [#allocation6 + $0x2] }
 0x246   :  { %s745_s27 = sshll.u32 %s2100_s23, 4  ;;  %s746_s10 = sld [smem:[#allocation8 + $0x7]] }
 0x247   :  { %s441_s3 = scalar_lea.hbm %s2197_s4, %s745_s27 }
 0x248   :  { %s1433_s1 = scalar_lea.hbm %s441_s3, 16  ;;  %p1436_p6 = scmp.lt.s32.totalorder %s441_s3, %s2197_s4 }
 0x249   :  { %p1434_p5 = scmp.ne.s32.totalorder %s441_s3, %s1433_s1  ;;  %p1437_p7 = scmp.lt.s32.totalorder %s1734_s29, %s1433_s1 }
 0x24b   :  { %p1438_p8 = por %p1437_p7, %p1436_p6 }
 0x24d   :  { %p1439_p9 = pnand %p1438_p8, %p1434_p5 }
 0x24f   :  { %1442 = shalt.err (!%p1439_p9)  }
 0x250   :  { %s1443_s22 = scalar_lea.vmem %s2116_s9, 16  ;;  %p1448_p11 = scmp.lt.s32.totalorder %s2116_s9, %s1791_s2 }
 0x251   :  { %p1444_p10 = scmp.ne.s32.totalorder %s2116_s9, %s1443_s22  ;;  %p1449_p12 = scmp.lt.s32.totalorder %s1800_s18, %s1443_s22 }
 0x253   :  { %p1450_p13 = por %p1449_p12, %p1448_p11 }
 0x255   :  { %p1451_p0 = pnand %p1450_p13, %p1444_p10 }
 0x257   :  { %1454 = shalt.err (!%p1451_p0)  }
 0x258   :  { %453 = dma.hbm_to_vmem [thread:$0]  %s441_s3, 16, %s2116_s9, [#allocation6 + $0x3] }
 0x259   :  { %s1663_s23 = smov [#allocation2 + $0x7]   ;;  %s748_s30 = sld [smem:[#allocation9 + $0x7]] }
 0x25a   :  { %s466_s28 = sshll.u32 %s1663_s23, 4  ;;  %s1664_s24 = smov [#allocation3 + $0x7]   ;;  %s467_s28 = int_to_ptr.vmem [resolvable:$true] %s466_s28 }
 0x25b   :  { %s481_s15 = sshll.u32 %s1664_s24, 4  ;;  %s2142_s17 = sld [smem:[#allocation10 + $0x7]]  ;;  %s2144_s15 = int_to_ptr.vmem [resolvable:$true] %s481_s15 }
 0x25c   :  { %s747_s25 = sshll.u32 %s746_s10, 4 }
 0x25d   :  { %s457_s20 = scalar_lea.hbm %s2197_s4, %s747_s25 }
 0x25e   :  { %s1455_s0 = scalar_lea.hbm %s457_s20, 16  ;;  %p1458_p2 = scmp.lt.s32.totalorder %s457_s20, %s2197_s4 }
 0x25f   :  { %p1456_p1 = scmp.ne.s32.totalorder %s457_s20, %s1455_s0  ;;  %p1459_p3 = scmp.lt.s32.totalorder %s1734_s29, %s1455_s0 }
 0x261   :  { %p1460_p4 = por %p1459_p3, %p1458_p2 }
 0x263   :  { %p1461_p5 = pnand %p1460_p4, %p1456_p1 }
 0x265   :  { %1464 = shalt.err (!%p1461_p5)  }
 0x266   :  { %s1465_s9 = scalar_lea.vmem %s467_s28, 16  ;;  %p1470_p7 = scmp.lt.s32.totalorder %s467_s28, %s1717_s13 }
 0x267   :  { %p1466_p6 = scmp.ne.s32.totalorder %s467_s28, %s1465_s9  ;;  %p1471_p8 = scmp.lt.s32.totalorder %s1743_s8, %s1465_s9 }
 0x269   :  { %p1472_p9 = por %p1471_p8, %p1470_p7 }
 0x26b   :  { %p1473_p10 = pnand %p1472_p9, %p1466_p6 }
 0x26d   :  { %1476 = shalt.err (!%p1473_p10)  }
 0x26e   :  { %469 = dma.hbm_to_vmem [thread:$0]  %s457_s20, 16, %s467_s28, [#allocation6] }
 0x26f   :  { %s749_s10 = sshll.u32 %s748_s30, 4  ;;  %s1665_s3 = smov [#allocation4 + $0x7]  }
 0x270   :  { %s496_s12 = sshll.u32 %s1665_s3, 4  ;;  %s472_s24 = scalar_lea.hbm %s2198_s5, %s749_s10  ;;  %s2158_s12 = int_to_ptr.vmem [resolvable:$true] %s496_s12 }
 0x271   :  { %s1477_s25 = scalar_lea.hbm %s472_s24, 16  ;;  %p1480_p12 = scmp.lt.s32.totalorder %s472_s24, %s2198_s5 }
 0x272   :  { %p1478_p11 = scmp.ne.s32.totalorder %s472_s24, %s1477_s25  ;;  %p1481_p13 = scmp.lt.s32.totalorder %s1756_s14, %s1477_s25 }
 0x274   :  { %p1482_p0 = por %p1481_p13, %p1480_p12 }
 0x276   :  { %p1483_p1 = pnand %p1482_p0, %p1478_p11 }
 0x278   :  { %1486 = shalt.err (!%p1483_p1)  }
 0x279   :  { %s1487_s13 = scalar_lea.vmem %s2144_s15, 16  ;;  %p1492_p3 = scmp.lt.s32.totalorder %s2144_s15, %s1721_s16 }
 0x27a   :  { %p1488_p2 = scmp.ne.s32.totalorder %s2144_s15, %s1487_s13  ;;  %p1493_p4 = scmp.lt.s32.totalorder %s1765_s21, %s1487_s13 }
 0x27c   :  { %p1494_p5 = por %p1493_p4, %p1492_p3 }
 0x27e   :  { %p1495_p6 = pnand %p1494_p5, %p1488_p2 }
 0x280   :  { %1498 = shalt.err (!%p1495_p6)  }
 0x281   :  { %484 = dma.hbm_to_vmem [thread:$0]  %s472_s24, 16, %s2144_s15, [#allocation6 + $0x1] }
 0x282   :  { %s751_s5 = sshll.u32 %s2142_s17, 4  ;;  %s752_s8 = sld [smem:[#allocation11 + $0x7]] }
 0x283   :  { %s487_s30 = scalar_lea.hbm %s2197_s4, %s751_s5 }
 0x284   :  { %s1499_s20 = scalar_lea.hbm %s487_s30, 16  ;;  %p1502_p8 = scmp.lt.s32.totalorder %s487_s30, %s2197_s4 }
 0x285   :  { %p1500_p7 = scmp.ne.s32.totalorder %s487_s30, %s1499_s20  ;;  %p1503_p9 = scmp.lt.s32.totalorder %s1734_s29, %s1499_s20 }
 0x287   :  { %p1504_p10 = por %p1503_p9, %p1502_p8 }
 0x289   :  { %p1505_p11 = pnand %p1504_p10, %p1500_p7 }
 0x28b   :  { %1508 = shalt.err (!%p1505_p11)  }
 0x28c   :  { %s1509_s16 = scalar_lea.vmem %s2158_s12, 16  ;;  %p1514_p13 = scmp.lt.s32.totalorder %s2158_s12, %s1725_s19 }
 0x28d   :  { %p1510_p12 = scmp.ne.s32.totalorder %s2158_s12, %s1509_s16  ;;  %p1515_p0 = scmp.lt.s32.totalorder %s1782_s7, %s1509_s16 }
 0x28f   :  { %p1516_p1 = por %p1515_p0, %p1514_p13 }
 0x291   :  { %p1517_p2 = pnand %p1516_p1, %p1510_p12 }
 0x293   :  { %1520 = shalt.err (!%p1517_p2)  }
 0x294   :  { %499 = dma.hbm_to_vmem [thread:$0]  %s487_s30, 16, %s2158_s12, [#allocation6 + $0x2] }
 0x295   :  { %s1666_s21 = smov [#allocation5 + $0x7]   ;;  %s753_s17 = sshll.u32 %s752_s8, 4 }
 0x296   :  { %s511_s15 = sshll.u32 %s1666_s21, 4  ;;  %s502_s10 = scalar_lea.hbm %s2197_s4, %s753_s17  ;;  %s512_s15 = int_to_ptr.vmem [resolvable:$true] %s511_s15 }
 0x297   :  { %s1521_s3 = scalar_lea.hbm %s502_s10, 16  ;;  %p1524_p4 = scmp.lt.s32.totalorder %s502_s10, %s2197_s4 }
 0x298   :  { %p1522_p3 = scmp.ne.s32.totalorder %s502_s10, %s1521_s3  ;;  %p1525_p5 = scmp.lt.s32.totalorder %s1734_s29, %s1521_s3 }
 0x29a   :  { %p1526_p6 = por %p1525_p5, %p1524_p4 }
 0x29c   :  { %p1527_p7 = pnand %p1526_p6, %p1522_p3 }
 0x29e   :  { %1530 = shalt.err (!%p1527_p7)  }
 0x29f   :  { %s1531_s19 = scalar_lea.vmem %s512_s15, 16  ;;  %p1536_p9 = scmp.lt.s32.totalorder %s512_s15, %s1791_s2 }
 0x2a0   :  { %p1532_p8 = scmp.ne.s32.totalorder %s512_s15, %s1531_s19  ;;  %p1537_p10 = scmp.lt.s32.totalorder %s1800_s18, %s1531_s19 }
 0x2a2   :  { %p1538_p11 = por %p1537_p10, %p1536_p9 }
 0x2a4   :  { %p1539_p12 = pnand %p1538_p11, %p1532_p8 }
 0x2a6   :  { %1542 = shalt.err (!%p1539_p12)  }
 0x2a7   :  { %514 = dma.hbm_to_vmem [thread:$0]  %s502_s10, 16, %s512_s15, [#allocation6 + $0x3] }
 0x2a8   :  { %1565 = dma.done.wait [#allocation6], 16 }
 0x2a9   :  { %1566 = vsyncadd [#allocation6], 4294967280 }
 0x2aa   :  { %1567 = dma.done.wait [#allocation6 + $0x1], 16 }
 0x2ab   :  { %1568 = vsyncadd [#allocation6 + $0x1], 4294967280 }
 0x2ac   :  { %1569 = dma.done.wait [#allocation6 + $0x2], 16 }
 0x2ad   :  { %1570 = vsyncadd [#allocation6 + $0x2], 4294967280 }
 0x2ae   :  { %1571 = dma.done.wait [#allocation6 + $0x3], 16 }
 0x2af   :  { %1572 = vsyncadd [#allocation6 + $0x3], 4294967280 }
 0x2b0   :  { %1573 = dma.done.wait [#allocation6], 16 }
 0x2b1   :  { %1574 = vsyncadd [#allocation6], 4294967280 }
 0x2b2   :  { %1575 = dma.done.wait [#allocation6 + $0x1], 16 }
 0x2b3   :  { %1576 = vsyncadd [#allocation6 + $0x1], 4294967280 }
 0x2b4   :  { %1577 = dma.done.wait [#allocation6 + $0x2], 16 }
 0x2b5   :  { %1578 = vsyncadd [#allocation6 + $0x2], 4294967280 }
 0x2b6   :  { %1579 = dma.done.wait [#allocation6 + $0x3], 16 }
 0x2b7   :  { %1580 = vsyncadd [#allocation6 + $0x3], 4294967280 }
 0x2b8   :  { %1581 = dma.done.wait [#allocation6], 16 }
 0x2b9   :  { %1582 = vsyncadd [#allocation6], 4294967280 }
 0x2ba   :  { %1583 = dma.done.wait [#allocation6 + $0x1], 16 }
 0x2bb   :  { %1584 = vsyncadd [#allocation6 + $0x1], 4294967280 }
 0x2bc   :  { %1585 = dma.done.wait [#allocation6 + $0x2], 16 }
 0x2bd   :  { %1586 = vsyncadd [#allocation6 + $0x2], 4294967280 }
 0x2be   :  { %1587 = dma.done.wait [#allocation6 + $0x3], 16 }
 0x2bf   :  { %1588 = vsyncadd [#allocation6 + $0x3], 4294967280 }
 0x2c0   :  { %1589 = dma.done.wait [#allocation6], 16 }
 0x2c1   :  { %1590 = vsyncadd [#allocation6], 4294967280 }
 0x2c2   :  { %1591 = dma.done.wait [#allocation6 + $0x1], 16 }
 0x2c3   :  { %1592 = vsyncadd [#allocation6 + $0x1], 4294967280 }
 0x2c4   :  { %1593 = dma.done.wait [#allocation6 + $0x2], 16 }
 0x2c5   :  { %1594 = vsyncadd [#allocation6 + $0x2], 4294967280 }
 0x2c6   :  { %1595 = dma.done.wait [#allocation6 + $0x3], 16 }
 0x2c7   :  { %1596 = vsyncadd [#allocation6 + $0x3], 4294967280 }
 0x2c8   :  { %1597 = dma.done.wait [#allocation6], 16 }
 0x2c9   :  { %1598 = vsyncadd [#allocation6], 4294967280 }
 0x2ca   :  { %1599 = dma.done.wait [#allocation6 + $0x1], 16 }
 0x2cb   :  { %1600 = vsyncadd [#allocation6 + $0x1], 4294967280 }
 0x2cc   :  { %1601 = dma.done.wait [#allocation6 + $0x2], 16 }
 0x2cd   :  { %1602 = vsyncadd [#allocation6 + $0x2], 4294967280 }
 0x2ce   :  { %1603 = dma.done.wait [#allocation6 + $0x3], 16 }
 0x2cf   :  { %1604 = vsyncadd [#allocation6 + $0x3], 4294967280 }
 0x2d0   :  { %1605 = dma.done.wait [#allocation6], 16 }
 0x2d1   :  { %1606 = vsyncadd [#allocation6], 4294967280 }
 0x2d2   :  { %1607 = dma.done.wait [#allocation6 + $0x1], 16 }
 0x2d3   :  { %1608 = vsyncadd [#allocation6 + $0x1], 4294967280 }
 0x2d4   :  { %1609 = dma.done.wait [#allocation6 + $0x2], 16 }
 0x2d5   :  { %1610 = vsyncadd [#allocation6 + $0x2], 4294967280 }
 0x2d6   :  { %1611 = dma.done.wait [#allocation6 + $0x3], 16 }
 0x2d7   :  { %1612 = vsyncadd [#allocation6 + $0x3], 4294967280 }
 0x2d8   :  { %1613 = dma.done.wait [#allocation6], 16 }
 0x2d9   :  { %1614 = vsyncadd [#allocation6], 4294967280 }
 0x2da   :  { %1615 = dma.done.wait [#allocation6 + $0x1], 16 }
 0x2db   :  { %1616 = vsyncadd [#allocation6 + $0x1], 4294967280 }
 0x2dc   :  { %1617 = dma.done.wait [#allocation6 + $0x2], 16 }
 0x2dd   :  { %1618 = vsyncadd [#allocation6 + $0x2], 4294967280 }
 0x2de   :  { %1619 = dma.done.wait [#allocation6 + $0x3], 16 }
 0x2df   :  { %1620 = vsyncadd [#allocation6 + $0x3], 4294967280 }
 0x2e0   :  { %1621 = dma.done.wait [#allocation6], 16 }
 0x2e1   :  { %1622 = vsyncadd [#allocation6], 4294967280 }
 0x2e2   :  { %1623 = dma.done.wait [#allocation6 + $0x1], 16 }
 0x2e3   :  { %1624 = vsyncadd [#allocation6 + $0x1], 4294967280 }
 0x2e4   :  { %1625 = dma.done.wait [#allocation6 + $0x2], 16 }
 0x2e5   :  { %1626 = vsyncadd [#allocation6 + $0x2], 4294967280 }
 0x2e6   :  { %1627 = dma.done.wait [#allocation6 + $0x3], 16 }
 0x2e7   :  { %1628 = vsyncadd [#allocation6 + $0x3], 4294967280  ;;  %v580_v0 = vld [vmem:[#allocation2] sm:$0xff]  ;;  %v581_v1 = vld [vmem:[#allocation3] sm:$0xff]  ;;  %s1667_s4 = smov [#allocation12]  }
 0x2e8   :  { %v583_v2 = vld [vmem:[#allocation4] sm:$0xff]  ;;  %s595_s29 = sshll.u32 %s1667_s4, 4  ;;  %v582_v3 = vadd.f32 %v581_v1, %v580_v0  ;;  %v586_v4 = vld [vmem:[#allocation5] sm:$0xff]  ;;  %s596_s29 = int_to_ptr.vmem [resolvable:$true] %s595_s29 }
 0x2e9   :  { %s1543_s7 = scalar_lea.vmem %s596_s29, 256  ;;  %p1548_p0 = scmp.lt.s32.totalorder %s596_s29, %s596_s29 }
 0x2ea   :  { %v584_v5 = vsub.f32 %v582_v3, %v583_v2  ;;  %v587_v6 = vsub.f32 %v582_v3, %v586_v4  ;;  %p1544_p13 = scmp.ne.s32.totalorder %s596_s29, %s1543_s7  ;;  %p1549_p1 = scmp.lt.s32.totalorder %s1543_s7, %s1543_s7 }
 0x2ec   :  { %585 = vst [vmem:[#allocation12] sm:$0xff] %v584_v5  ;;  %588 = vst [vmem:[#allocation12 + $0x8] sm:$0xff] %v587_v6  ;;  %p1550_p2 = por %p1549_p1, %p1548_p0 }
 0x2ee   :  { %p1551_p3 = pnand %p1550_p2, %p1544_p13 }
 0x2f0   :  { %1554 = shalt.err (!%p1551_p3)
}
 0x2f1   :  { %598 = dma.vmem_to_hbm [thread:$0]  %s596_s29, 256, %s2199_s6, [#allocation13]  }
 0x2f2   :  { %1629 = dma.done.wait [#allocation13], 256  }
 0x2f3   :  { %1630 = vsyncadd [#allocation13], 4294967040 }
 0x2f4   :  { %602 = vsyncpa [#allocation13], 1 }
 0x2f5   :  { %603 = vsyncmov [#allocation6] }
 0x2f8   :  { %s604_s12 = vpop.sfrf %603 }
 0x2f9   :  { %p754_p4 = scmp.ne.s32.totalorder %s604_s12, 0 }
 0x2fb   :  { %608 = shalt.err (%p754_p4)  }
 0x2fc   :  { %610 = vsyncmov [#allocation6 + $0x1] }
 0x2ff   :  { %s611_s24 = vpop.sfrf %610 }
 0x300   :  { %p755_p5 = scmp.ne.s32.totalorder %s611_s24, 0 }
 0x302   :  { %615 = shalt.err (%p755_p5)  }
 0x303   :  { %617 = vsyncmov [#allocation6 + $0x2] }
 0x306   :  { %s618_s25 = vpop.sfrf %617 }
 0x307   :  { %p756_p6 = scmp.ne.s32.totalorder %s618_s25, 0 }
 0x309   :  { %622 = shalt.err (%p756_p6)  }
 0x30a   :  { %624 = vsyncmov [#allocation6 + $0x3] }
 0x30d   :  { %s625_s26 = vpop.sfrf %624 }
 0x30e   :  { %p757_p7 = scmp.ne.s32.totalorder %s625_s26, 0 }
 0x310   :  { %629 = shalt.err (%p757_p7)  }

</bundles_post_ra>
